<compile_context>
chip_gen: v6e
topology: v6e:2x2x1
jax: 0.10.0
libtpu: 0.0.40
codegen_flags: <defaults>
</compile_context>

<pallas_src>
import jax
import jax.numpy as jnp
from jax.experimental import pallas as pl
from jax.experimental.pallas import tpu as pltpu

# True layer widths of the LongDense MLP.
DIMS = [58, 752, 576, 256, 192, 96, 3]
# Input feature dim kept at its true extent (58 == full last dim -> legal block);
# hidden/output dims padded up to multiples of 128.
DIMS_PAD = [58, 768, 640, 256, 256, 128, 128]
BN_EPS = 1e-5

# Batch-tile cap: 512 keeps per-step VMEM ~5-6 MiB (safe on v5e's 16 MiB scoped default)
# while making per-step MXU work large relative to the ~0.35us per-grid-step overhead.
MAX_BATCH_TILE = 512


def _round_up(n, m):
    return ((n + m - 1) // m) * m


def _choose_batch_tile(B):
    """Pick the batch tile.

    * B < 64: single tiny step (too small to split usefully).
    * 64 <= B <= 1024: exactly two grid steps so v7x's two TensorCores both get work.
    * B > 1024: tiles of MAX_BATCH_TILE (grid >= 3 steps, still dual-TC friendly).
    """
    if B < 64:
        return max(8, _round_up(B, 8))
    if B <= 2 * MAX_BATCH_TILE:
        return _round_up((B + 1) // 2, 8)
    return MAX_BATCH_TILE


def _mlp_kernel(x_ref,
                w1, b1, w2, b2, w3, b3, w4, b4, w5, b5, w6, b6,
                o_ref):
    """Fused 6-layer MLP on one batch tile.

    5x (bf16 matmul with f32 accumulation + f32 bias + ReLU, recast to bf16),
    then final matmul + bias stored as f32.  BN is pre-folded into (w, b) and
    weights are pre-transposed to [in, out], so the hot path is pure MXU matmuls
    plus cheap VPU bias/ReLU work.
    """
    def layer(h, w, b):
        acc = jnp.dot(h, w[...], preferred_element_type=jnp.float32) + b[...]
        return jnp.maximum(acc, 0.0).astype(jnp.bfloat16)

    h = x_ref[...].astype(jnp.bfloat16)  # f32 [TB, 58] -> bf16 in-kernel (no wrapper pad pass)
    h = layer(h, w1, b1)                 # [TB, 768]
    h = layer(h, w2, b2)                 # [TB, 640]
    h = layer(h, w3, b3)                 # [TB, 256]
    h = layer(h, w4, b4)                 # [TB, 256]
    h = layer(h, w5, b5)                 # [TB, 128]
    o_ref[...] = (jnp.dot(h, w6[...], preferred_element_type=jnp.float32)
                  + b6[...]).astype(o_ref.dtype)   # [TB, 128] f32, lane-dense store


def long_dense_forward(x, fused_params):
    """x: [B, 58] float32.  fused_params: 6 tuples (w_t bf16 [in(_pad),out_pad], b f32 [1,out_pad])."""
    B = x.shape[0]
    tb = _choose_batch_tile(B)
    b_pad = _round_up(B, tb)
    if b_pad != B:
        # Only materialize a padded copy when the batch doesn't tile evenly.
        x = jnp.zeros((b_pad, DIMS[0]), x.dtype).at[:B].set(x)

    flat_args = [x]
    # x / output tiles move with the grid.
    in_specs = [pl.BlockSpec((tb, DIMS[0]), lambda i: (i, 0))]
    # Weights & biases: constant block index -> VMEM-resident; single-buffered since the
    # second pipeline buffer would never be used (saves ~1.6 MiB of duplicated bf16 weights).
    weight_mode = pl.Buffered(1)
    for (wt, b) in fused_params:
        flat_args.append(wt)
        flat_args.append(b)
        in_specs.append(pl.BlockSpec(wt.shape, lambda i: (0, 0), pipeline_mode=weight_mode))
        in_specs.append(pl.BlockSpec(b.shape, lambda i: (0, 0), pipeline_mode=weight_mode))
    out_spec = pl.BlockSpec((tb, DIMS_PAD[-1]), lambda i: (i, 0))

    flops = 2 * b_pad * sum(DIMS_PAD[i] * DIMS_PAD[i + 1] for i in range(6))
    bytes_accessed = (sum(int(a.size) * a.dtype.itemsize for a in flat_args)
                      + b_pad * DIMS_PAD[-1] * 4)

    out_pad = pl.pallas_call(
        _mlp_kernel,
        out_shape=jax.ShapeDtypeStruct((b_pad, DIMS_PAD[-1]), jnp.float32),
        grid_spec=pl.GridSpec(
            grid=(b_pad // tb,),
            in_specs=in_specs,
            out_specs=out_spec,
        ),
        compiler_params=pltpu.CompilerParams(
            dimension_semantics=("parallel",)),
        cost_estimate=pl.CostEstimate(
            flops=flops, transcendentals=0, bytes_accessed=bytes_accessed),
    )(*flat_args)

    # Slice away batch and lane padding outside the kernel (lane-dense stores inside).
    return out_pad[:B, :DIMS[-1]]


def init_params(key):
    """Deterministic parameters for Linear + BatchNorm1d pairs (and final Linear)."""
    params = []
    for li in range(6):
        d_in, d_out = DIMS[li], DIMS[li + 1]
        key, kw, kb, kg, kbe, km, kv = jax.random.split(key, 7)
        bound = 1.0 / (d_in ** 0.5)
        W = jax.random.uniform(kw, (d_out, d_in), jnp.float32, -bound, bound)
        b = jax.random.uniform(kb, (d_out,), jnp.float32, -bound, bound)
        if li < 5:  # layers 0..4 have BatchNorm1d after the Linear
            gamma = 1.0 + 0.1 * jax.random.normal(kg, (d_out,), jnp.float32)
            beta = 0.1 * jax.random.normal(kbe, (d_out,), jnp.float32)
            rmean = 0.05 * jax.random.normal(km, (d_out,), jnp.float32)
            rvar = 1.0 + 0.1 * jnp.abs(jax.random.normal(kv, (d_out,), jnp.float32))
            bn = (gamma, beta, rmean, rvar)
        else:
            bn = None
        params.append((W, b, bn))
    return params


def fold_bn_pad(params):
    """Fold eval-mode BatchNorm1d into the preceding Linear, transpose W to [in, out],
    zero-pad output dims to lane-friendly shapes, cast weights to bf16 (biases stay f32)."""
    fused = []
    for li, (W, b, bn) in enumerate(params):
        if bn is not None:
            gamma, beta, rmean, rvar = bn
            scale = gamma / jnp.sqrt(rvar + BN_EPS)            # [out]
            W_f = W * scale[:, None]                           # [out, in]
            b_f = (b - rmean) * scale + beta                   # [out]
        else:
            W_f, b_f = W, b
        d_in, d_out = DIMS[li], DIMS[li + 1]
        d_in_p, d_out_p = DIMS_PAD[li], DIMS_PAD[li + 1]
        Wt = jnp.zeros((d_in_p, d_out_p), jnp.float32).at[:d_in, :d_out].set(W_f.T)
        bp = jnp.zeros((1, d_out_p), jnp.float32).at[0, :d_out].set(b_f)
        fused.append((Wt.astype(jnp.bfloat16), bp))
    return fused


def reference_forward(x, fused_params):
    """Pure-JAX reference with the same bf16-weight / f32-accumulate precision as the kernel."""
    h = x.astype(jnp.bfloat16)
    out = None
    for i, (wt, b) in enumerate(fused_params):
        acc = jnp.dot(h, wt, preferred_element_type=jnp.float32) + b
        if i < 5:
            h = jnp.maximum(acc, 0.0).astype(jnp.bfloat16)
        else:
            out = acc
    return out[:, :DIMS[-1]]


if __name__ == "__main__":
    key = jax.random.PRNGKey(0)
    kx1, kx2, kp = jax.random.split(key, 3)

    params = init_params(kp)
    fused = fold_bn_pad(params)

    # Tiny-batch path (single grid step).
    B1 = 8
    x1 = jax.random.normal(kx1, (B1, DIMS[0]), jnp.float32)
    out1 = jax.block_until_ready(long_dense_forward(x1, fused))
    ref1 = reference_forward(x1, fused)
    assert out1.shape == (B1, DIMS[-1])
    assert jnp.allclose(out1, ref1, atol=1e-2, rtol=1e-2), "mismatch vs JAX reference (B=8)"

    # Non-divisible batch: exercises batch padding + multi-step grid + output slice.
    B2 = 300
    x2 = jax.random.normal(kx2, (B2, DIMS[0]), jnp.float32)
    out2 = jax.block_until_ready(long_dense_forward(x2, fused))
    ref2 = reference_forward(x2, fused)
    assert out2.shape == (B2, DIMS[-1])
    assert jnp.allclose(out2, ref2, atol=1e-2, rtol=1e-2), "mismatch vs JAX reference (B=300)"

    print("KERNEL_OK")
</pallas_src>

<mosaic_0001>
module attributes {stable_mosaic.version = 11 : i64} {
  func.func @_mlp_kernel(%arg0: i32, %arg1: memref<8x58xf32, #tpu.memory_space<vmem>>, %arg2: memref<58x768xbf16, #tpu.memory_space<vmem>>, %arg3: memref<1x768xf32, #tpu.memory_space<vmem>>, %arg4: memref<768x640xbf16, #tpu.memory_space<vmem>>, %arg5: memref<1x640xf32, #tpu.memory_space<vmem>>, %arg6: memref<640x256xbf16, #tpu.memory_space<vmem>>, %arg7: memref<1x256xf32, #tpu.memory_space<vmem>>, %arg8: memref<256x256xbf16, #tpu.memory_space<vmem>>, %arg9: memref<1x256xf32, #tpu.memory_space<vmem>>, %arg10: memref<256x128xbf16, #tpu.memory_space<vmem>>, %arg11: memref<1x128xf32, #tpu.memory_space<vmem>>, %arg12: memref<128x128xbf16, #tpu.memory_space<vmem>>, %arg13: memref<1x128xf32, #tpu.memory_space<vmem>>, %arg14: memref<8x128xf32, #tpu.memory_space<vmem>>) attributes {dimension_semantics = [#tpu.dimension_semantics<parallel>], iteration_bounds = array<i64: 1>, scalar_prefetch = 0 : i64, scratch_operands = 0 : i64, tpu.core_type = #tpu.core_type<tc>, window_params = [{transform_indices = @transform_0, window_bounds = array<i64: 8, 58>}, {pipeline_mode = #tpu.pipeline_mode<synchronous>, transform_indices = @transform_1, window_bounds = array<i64: 58, 768>}, {pipeline_mode = #tpu.pipeline_mode<synchronous>, transform_indices = @transform_2, window_bounds = array<i64: 1, 768>}, {pipeline_mode = #tpu.pipeline_mode<synchronous>, transform_indices = @transform_3, window_bounds = array<i64: 768, 640>}, {pipeline_mode = #tpu.pipeline_mode<synchronous>, transform_indices = @transform_4, window_bounds = array<i64: 1, 640>}, {pipeline_mode = #tpu.pipeline_mode<synchronous>, transform_indices = @transform_5, window_bounds = array<i64: 640, 256>}, {pipeline_mode = #tpu.pipeline_mode<synchronous>, transform_indices = @transform_6, window_bounds = array<i64: 1, 256>}, {pipeline_mode = #tpu.pipeline_mode<synchronous>, transform_indices = @transform_7, window_bounds = array<i64: 256, 256>}, {pipeline_mode = #tpu.pipeline_mode<synchronous>, transform_indices = @transform_8, window_bounds = array<i64: 1, 256>}, {pipeline_mode = #tpu.pipeline_mode<synchronous>, transform_indices = @transform_9, window_bounds = array<i64: 256, 128>}, {pipeline_mode = #tpu.pipeline_mode<synchronous>, transform_indices = @transform_10, window_bounds = array<i64: 1, 128>}, {pipeline_mode = #tpu.pipeline_mode<synchronous>, transform_indices = @transform_11, window_bounds = array<i64: 128, 128>}, {pipeline_mode = #tpu.pipeline_mode<synchronous>, transform_indices = @transform_12, window_bounds = array<i64: 1, 128>}, {transform_indices = @transform_13, window_bounds = array<i64: 8, 128>}]} {
    %c0 = arith.constant 0 : index
    %c0_0 = arith.constant 0 : index
    %0 = vector.load %arg1[%c0, %c0_0] : memref<8x58xf32, #tpu.memory_space<vmem>>, vector<8x58xf32>
    %1 = arith.truncf %0 : vector<8x58xf32> to vector<8x58xbf16>
    %c0_1 = arith.constant 0 : index
    %c0_2 = arith.constant 0 : index
    %2 = vector.load %arg2[%c0_1, %c0_2] : memref<58x768xbf16, #tpu.memory_space<vmem>>, vector<58x768xbf16>
    %cst = arith.constant dense<0.000000e+00> : vector<8x768xf32>
    %3 = tpu.matmul %1, %2, %cst {dimension_numbers = #tpu.dot_dimension_numbers<[1], [0], [0], [1], [0, 0, 1, 1], [], []>} : vector<8x58xbf16>, vector<58x768xbf16>, vector<8x768xf32> -> vector<8x768xf32>
    %c0_3 = arith.constant 0 : index
    %c0_4 = arith.constant 0 : index
    %4 = vector.load %arg3[%c0_3, %c0_4] : memref<1x768xf32, #tpu.memory_space<vmem>>, vector<1x768xf32>
    %5 = vector.broadcast %4 : vector<1x768xf32> to vector<8x768xf32>
    %6 = arith.addf %3, %5 : vector<8x768xf32>
    %cst_5 = arith.constant 0.000000e+00 : f32
    %7 = vector.broadcast %cst_5 : f32 to vector<8x768xf32>
    %8 = arith.maximumf %6, %7 : vector<8x768xf32>
    %9 = arith.truncf %8 : vector<8x768xf32> to vector<8x768xbf16>
    %c0_6 = arith.constant 0 : index
    %c0_7 = arith.constant 0 : index
    %10 = vector.load %arg4[%c0_6, %c0_7] : memref<768x640xbf16, #tpu.memory_space<vmem>>, vector<768x640xbf16>
    %cst_8 = arith.constant dense<0.000000e+00> : vector<8x640xf32>
    %11 = tpu.matmul %9, %10, %cst_8 {dimension_numbers = #tpu.dot_dimension_numbers<[1], [0], [0], [1], [0, 0, 1, 1], [], []>} : vector<8x768xbf16>, vector<768x640xbf16>, vector<8x640xf32> -> vector<8x640xf32>
    %c0_9 = arith.constant 0 : index
    %c0_10 = arith.constant 0 : index
    %12 = vector.load %arg5[%c0_9, %c0_10] : memref<1x640xf32, #tpu.memory_space<vmem>>, vector<1x640xf32>
    %13 = vector.broadcast %12 : vector<1x640xf32> to vector<8x640xf32>
    %14 = arith.addf %11, %13 : vector<8x640xf32>
    %cst_11 = arith.constant 0.000000e+00 : f32
    %15 = vector.broadcast %cst_11 : f32 to vector<8x640xf32>
    %16 = arith.maximumf %14, %15 : vector<8x640xf32>
    %17 = arith.truncf %16 : vector<8x640xf32> to vector<8x640xbf16>
    %c0_12 = arith.constant 0 : index
    %c0_13 = arith.constant 0 : index
    %18 = vector.load %arg6[%c0_12, %c0_13] : memref<640x256xbf16, #tpu.memory_space<vmem>>, vector<640x256xbf16>
    %cst_14 = arith.constant dense<0.000000e+00> : vector<8x256xf32>
    %19 = tpu.matmul %17, %18, %cst_14 {dimension_numbers = #tpu.dot_dimension_numbers<[1], [0], [0], [1], [0, 0, 1, 1], [], []>} : vector<8x640xbf16>, vector<640x256xbf16>, vector<8x256xf32> -> vector<8x256xf32>
    %c0_15 = arith.constant 0 : index
    %c0_16 = arith.constant 0 : index
    %20 = vector.load %arg7[%c0_15, %c0_16] : memref<1x256xf32, #tpu.memory_space<vmem>>, vector<1x256xf32>
    %21 = vector.broadcast %20 : vector<1x256xf32> to vector<8x256xf32>
    %22 = arith.addf %19, %21 : vector<8x256xf32>
    %cst_17 = arith.constant 0.000000e+00 : f32
    %23 = vector.broadcast %cst_17 : f32 to vector<8x256xf32>
    %24 = arith.maximumf %22, %23 : vector<8x256xf32>
    %25 = arith.truncf %24 : vector<8x256xf32> to vector<8x256xbf16>
    %c0_18 = arith.constant 0 : index
    %c0_19 = arith.constant 0 : index
    %26 = vector.load %arg8[%c0_18, %c0_19] : memref<256x256xbf16, #tpu.memory_space<vmem>>, vector<256x256xbf16>
    %cst_20 = arith.constant dense<0.000000e+00> : vector<8x256xf32>
    %27 = tpu.matmul %25, %26, %cst_20 {dimension_numbers = #tpu.dot_dimension_numbers<[1], [0], [0], [1], [0, 0, 1, 1], [], []>} : vector<8x256xbf16>, vector<256x256xbf16>, vector<8x256xf32> -> vector<8x256xf32>
    %c0_21 = arith.constant 0 : index
    %c0_22 = arith.constant 0 : index
    %28 = vector.load %arg9[%c0_21, %c0_22] : memref<1x256xf32, #tpu.memory_space<vmem>>, vector<1x256xf32>
    %29 = vector.broadcast %28 : vector<1x256xf32> to vector<8x256xf32>
    %30 = arith.addf %27, %29 : vector<8x256xf32>
    %cst_23 = arith.constant 0.000000e+00 : f32
    %31 = vector.broadcast %cst_23 : f32 to vector<8x256xf32>
    %32 = arith.maximumf %30, %31 : vector<8x256xf32>
    %33 = arith.truncf %32 : vector<8x256xf32> to vector<8x256xbf16>
    %c0_24 = arith.constant 0 : index
    %c0_25 = arith.constant 0 : index
    %34 = vector.load %arg10[%c0_24, %c0_25] : memref<256x128xbf16, #tpu.memory_space<vmem>>, vector<256x128xbf16>
    %cst_26 = arith.constant dense<0.000000e+00> : vector<8x128xf32>
    %35 = tpu.matmul %33, %34, %cst_26 {dimension_numbers = #tpu.dot_dimension_numbers<[1], [0], [0], [1], [0, 0, 1, 1], [], []>} : vector<8x256xbf16>, vector<256x128xbf16>, vector<8x128xf32> -> vector<8x128xf32>
    %c0_27 = arith.constant 0 : index
    %c0_28 = arith.constant 0 : index
    %36 = vector.load %arg11[%c0_27, %c0_28] : memref<1x128xf32, #tpu.memory_space<vmem>>, vector<1x128xf32>
    %37 = vector.broadcast %36 : vector<1x128xf32> to vector<8x128xf32>
    %38 = arith.addf %35, %37 : vector<8x128xf32>
    %cst_29 = arith.constant 0.000000e+00 : f32
    %39 = vector.broadcast %cst_29 : f32 to vector<8x128xf32>
    %40 = arith.maximumf %38, %39 : vector<8x128xf32>
    %41 = arith.truncf %40 : vector<8x128xf32> to vector<8x128xbf16>
    %c0_30 = arith.constant 0 : index
    %c0_31 = arith.constant 0 : index
    %42 = vector.load %arg12[%c0_30, %c0_31] : memref<128x128xbf16, #tpu.memory_space<vmem>>, vector<128x128xbf16>
    %cst_32 = arith.constant dense<0.000000e+00> : vector<8x128xf32>
    %43 = tpu.matmul %41, %42, %cst_32 {dimension_numbers = #tpu.dot_dimension_numbers<[1], [0], [0], [1], [0, 0, 1, 1], [], []>} : vector<8x128xbf16>, vector<128x128xbf16>, vector<8x128xf32> -> vector<8x128xf32>
    %c0_33 = arith.constant 0 : index
    %c0_34 = arith.constant 0 : index
    %44 = vector.load %arg13[%c0_33, %c0_34] : memref<1x128xf32, #tpu.memory_space<vmem>>, vector<1x128xf32>
    %45 = vector.broadcast %44 : vector<1x128xf32> to vector<8x128xf32>
    %46 = arith.addf %43, %45 : vector<8x128xf32>
    %c0_35 = arith.constant 0 : index
    %c0_36 = arith.constant 0 : index
    %47 = vector.load %arg14[%c0_35, %c0_36] : memref<8x128xf32, #tpu.memory_space<vmem>>, vector<8x128xf32>
    tpu.vector_store %arg14[%c0_35, %c0_36], %46 {strides = array<i32>} : memref<8x128xf32, #tpu.memory_space<vmem>>, vector<8x128xf32>,
    return
  }
  func.func @transform_0(%arg0: i32) -> (i32, i32) {
    %c0_i32 = arith.constant 0 : i32
    %c0_i32_0 = arith.constant 0 : i32
    return %arg0, %c0_i32 : i32, i32
  }
  func.func @transform_1(%arg0: i32) -> (i32, i32) {
    %c0_i32 = arith.constant 0 : i32
    %c0_i32_0 = arith.constant 0 : i32
    %c0_i32_1 = arith.constant 0 : i32
    return %c0_i32, %c0_i32_0 : i32, i32
  }
  func.func @transform_2(%arg0: i32) -> (i32, i32) {
    %c0_i32 = arith.constant 0 : i32
    %c0_i32_0 = arith.constant 0 : i32
    %c0_i32_1 = arith.constant 0 : i32
    return %c0_i32, %c0_i32_0 : i32, i32
  }
  func.func @transform_3(%arg0: i32) -> (i32, i32) {
    %c0_i32 = arith.constant 0 : i32
    %c0_i32_0 = arith.constant 0 : i32
    %c0_i32_1 = arith.constant 0 : i32
    return %c0_i32, %c0_i32_0 : i32, i32
  }
  func.func @transform_4(%arg0: i32) -> (i32, i32) {
    %c0_i32 = arith.constant 0 : i32
    %c0_i32_0 = arith.constant 0 : i32
    %c0_i32_1 = arith.constant 0 : i32
    return %c0_i32, %c0_i32_0 : i32, i32
  }
  func.func @transform_5(%arg0: i32) -> (i32, i32) {
    %c0_i32 = arith.constant 0 : i32
    %c0_i32_0 = arith.constant 0 : i32
    %c0_i32_1 = arith.constant 0 : i32
    return %c0_i32, %c0_i32_0 : i32, i32
  }
  func.func @transform_6(%arg0: i32) -> (i32, i32) {
    %c0_i32 = arith.constant 0 : i32
    %c0_i32_0 = arith.constant 0 : i32
    %c0_i32_1 = arith.constant 0 : i32
    return %c0_i32, %c0_i32_0 : i32, i32
  }
  func.func @transform_7(%arg0: i32) -> (i32, i32) {
    %c0_i32 = arith.constant 0 : i32
    %c0_i32_0 = arith.constant 0 : i32
    %c0_i32_1 = arith.constant 0 : i32
    return %c0_i32, %c0_i32_0 : i32, i32
  }
  func.func @transform_8(%arg0: i32) -> (i32, i32) {
    %c0_i32 = arith.constant 0 : i32
    %c0_i32_0 = arith.constant 0 : i32
    %c0_i32_1 = arith.constant 0 : i32
    return %c0_i32, %c0_i32_0 : i32, i32
  }
  func.func @transform_9(%arg0: i32) -> (i32, i32) {
    %c0_i32 = arith.constant 0 : i32
    %c0_i32_0 = arith.constant 0 : i32
    %c0_i32_1 = arith.constant 0 : i32
    return %c0_i32, %c0_i32_0 : i32, i32
  }
  func.func @transform_10(%arg0: i32) -> (i32, i32) {
    %c0_i32 = arith.constant 0 : i32
    %c0_i32_0 = arith.constant 0 : i32
    %c0_i32_1 = arith.constant 0 : i32
    return %c0_i32, %c0_i32_0 : i32, i32
  }
  func.func @transform_11(%arg0: i32) -> (i32, i32) {
    %c0_i32 = arith.constant 0 : i32
    %c0_i32_0 = arith.constant 0 : i32
    %c0_i32_1 = arith.constant 0 : i32
    return %c0_i32, %c0_i32_0 : i32, i32
  }
  func.func @transform_12(%arg0: i32) -> (i32, i32) {
    %c0_i32 = arith.constant 0 : i32
    %c0_i32_0 = arith.constant 0 : i32
    %c0_i32_1 = arith.constant 0 : i32
    return %c0_i32, %c0_i32_0 : i32, i32
  }
  func.func @transform_13(%arg0: i32) -> (i32, i32) {
    %c0_i32 = arith.constant 0 : i32
    %c0_i32_0 = arith.constant 0 : i32
    return %arg0, %c0_i32 : i32, i32
  }
}

</mosaic_0001>

<bundles_post_ra>
// kernel: tpu_custom_call.1
= control target key start
LH: loop header
LB: loop body
LE: loop exit
PB: predicated region body
PF: predicated region fallthrough
CT: control target
= control target key end

     0   :  { %18 = vsyncpa [#allocation3], 0  ;;  %s5140_s0 = inlined_call_operand.hbm [shape: f32[8,58], index: 0, kind: input, shape index: {}]   ;;  %s5141_s1 = inlined_call_operand.hbm [shape: bf16[58,768], index: 1, kind: input, shape index: {}]   ;;  %s5142_s2 = inlined_call_operand.hbm [shape: f32[1,768], index: 2, kind: input, shape index: {}]   ;;  %s5143_s3 = inlined_call_operand.hbm [shape: bf16[768,640], index: 3, kind: input, shape index: {}]   ;;  %s5144_s4 = inlined_call_operand.vmem [shape: f32[1,640], index: 4, kind: input, shape index: {}]   ;;  %s5145_s5 = inlined_call_operand.hbm [shape: bf16[640,256], index: 5, kind: input, shape index: {}]   ;;  %s5146_s6 = inlined_call_operand.vmem [shape: f32[1,256], index: 6, kind: input, shape index: {}]   ;;  %s5147_s7 = inlined_call_operand.hbm [shape: bf16[256,256], index: 7, kind: input, shape index: {}]   ;;  %s5148_s8 = inlined_call_operand.vmem [shape: f32[1,256], index: 8, kind: input, shape index: {}]   ;;  %s5149_s9 = inlined_call_operand.hbm [shape: bf16[256,128], index: 9, kind: input, shape index: {}]   ;;  %s5150_s10 = inlined_call_operand.vmem [shape: f32[1,128], index: 10, kind: input, shape index: {}]   ;;  %s5151_s11 = inlined_call_operand.hbm [shape: bf16[128,128], index: 11, kind: input, shape index: {}]   ;;  %s5152_s12 = inlined_call_operand.vmem [shape: f32[1,128], index: 12, kind: input, shape index: {}]   ;;  %s5153_s13 = inlined_call_operand.hbm [shape: f32[8,128], index: 13, kind: output, shape index: {}]  }
   0x1   :  { %19 = vsyncpa [#allocation6], 0 }
   0x2   :  { %20 = vsyncpa [#allocation9], 0 }
   0x3   :  { %21 = vsyncpa [#allocation12], 0 }
   0x4   :  { %22 = vsyncpa [#allocation15], 0 }
   0x5   :  { %23 = vsyncpa [#allocation4], 0  ;;  %s4897_s25 = smov [#allocation5]  }
   0x6   :  { %s39_s26 = sshll.u32 %s4897_s25, 4  ;;  %s40_s26 = int_to_ptr.vmem [resolvable:$true] %s39_s26 }
   0x7   :  { %s4713_s27 = scalar_lea.vmem %s40_s26, 3072  ;;  %p4718_p1 = scmp.lt.s32.totalorder %s40_s26, %s40_s26 }
   0x8   :  { %p4714_p0 = scmp.ne.s32.totalorder %s40_s26, %s4713_s27  ;;  %p4719_p2 = scmp.lt.s32.totalorder %s4713_s27, %s4713_s27 }
   0xa   :  { %p4720_p3 = por %p4719_p2, %p4718_p1 }
   0xc   :  { %p4721_p4 = pnand %p4720_p3, %p4714_p0 }
   0xe   :  { %4724 = shalt.err (!%p4721_p4)
}
   0xf   :  { %s4898_s28 = smov 384   ;;  %s4899_s29 = smov 24  }
  0x10   :  { %45 = dma.hbm_to_vmem [thread:$0]  %s5141_s1, 3072, %s40_s26, [#allocation6], %s4898_s28, %s4898_s28, %s4899_s29  }
  0x11   :  { %s4900_s15 = smov [#allocation8]  }
  0x12   :  { %s61_s16 = sshll.u32 %s4900_s15, 4  ;;  %s62_s16 = int_to_ptr.vmem [resolvable:$true] %s61_s16 }
  0x13   :  { %s4733_s17 = scalar_lea.vmem %s62_s16, 30720  ;;  %p4738_p6 = scmp.lt.s32.totalorder %s62_s16, %s62_s16 }
  0x14   :  { %p4734_p5 = scmp.ne.s32.totalorder %s62_s16, %s4733_s17  ;;  %p4739_p7 = scmp.lt.s32.totalorder %s4733_s17, %s4733_s17 }
  0x16   :  { %p4740_p8 = por %p4739_p7, %p4738_p6 }
  0x18   :  { %p4741_p9 = pnand %p4740_p8, %p4734_p5 }
  0x1a   :  { %4744 = shalt.err (!%p4741_p9)
}
  0x1b   :  { %s4901_s18 = smov 320   ;;  %s4902_s19 = smov 20  }
  0x1c   :  { %67 = dma.hbm_to_vmem [thread:$0]  %s5143_s3, 30720, %s62_s16, [#allocation9], %s4901_s18, %s4901_s18, %s4902_s19  }
  0x1d   :  { %s4903_s22 = smov [#allocation11]   ;;  %s4904_s24 = smov [#allocation2]  }
  0x1e   :  { %s89_s23 = sshll.u32 %s4903_s22, 4  ;;  %s30_s1 = sshll.u32 %s4904_s24, 4  ;;  %s90_s23 = int_to_ptr.vmem [resolvable:$true] %s89_s23  ;;  %s31_s1 = int_to_ptr.vmem [resolvable:$true] %s30_s1 }
  0x1f   :  { %s4753_s25 = scalar_lea.vmem %s90_s23, 4096  ;;  %p4758_p11 = scmp.lt.s32.totalorder %s90_s23, %s90_s23 }
  0x20   :  { %p4754_p10 = scmp.ne.s32.totalorder %s90_s23, %s4753_s25  ;;  %p4759_p12 = scmp.lt.s32.totalorder %s4753_s25, %s4753_s25 }
  0x22   :  { %p4760_p13 = por %p4759_p12, %p4758_p11 }
  0x24   :  { %p4761_p0 = pnand %p4760_p13, %p4754_p10 }
  0x26   :  { %4764 = shalt.err (!%p4761_p0)
}
  0x27   :  { %s4905_s26 = smov 128   ;;  %s4906_s27 = smov 8  }
  0x28   :  { %95 = dma.hbm_to_vmem [thread:$0]  %s5147_s7, 4096, %s90_s23, [#allocation12], %s4905_s26, %s4905_s26, %s4906_s27  }
  0x29   :  { %s4773_s29 = scalar_lea.vmem %s31_s1, 128  ;;  %p4778_p2 = scmp.lt.s32.totalorder %s31_s1, %s31_s1 }
  0x2a   :  { %p4774_p1 = scmp.ne.s32.totalorder %s31_s1, %s4773_s29  ;;  %p4779_p3 = scmp.lt.s32.totalorder %s4773_s29, %s4773_s29 }
  0x2c   :  { %p4780_p4 = por %p4779_p3, %p4778_p2 }
  0x2e   :  { %p4781_p5 = pnand %p4780_p4, %p4774_p1 }
  0x30   :  { %4784 = shalt.err (!%p4781_p5)
}
  0x31   :  { %33 = dma.hbm_to_vmem [thread:$0]  %s5140_s0, 128, %s31_s1, [#allocation3]  }
  0x32   :  { %s4907_s15 = smov [#allocation7]   ;;  %s4908_s17 = smov [#allocation10]  }
  0x33   :  { %s52_s16 = sshll.u32 %s4907_s15, 4  ;;  %s75_s18 = sshll.u32 %s4908_s17, 4  ;;  %s53_s16 = int_to_ptr.vmem [resolvable:$true] %s52_s16  ;;  %s76_s18 = int_to_ptr.vmem [resolvable:$true] %s75_s18 }
  0x34   :  { %s4793_s19 = scalar_lea.vmem %s53_s16, 96  ;;  %p4798_p7 = scmp.lt.s32.totalorder %s53_s16, %s53_s16 }
  0x35   :  { %p4794_p6 = scmp.ne.s32.totalorder %s53_s16, %s4793_s19  ;;  %p4799_p8 = scmp.lt.s32.totalorder %s4793_s19, %s4793_s19 }
  0x37   :  { %p4800_p9 = por %p4799_p8, %p4798_p7 }
  0x39   :  { %p4801_p10 = pnand %p4800_p9, %p4794_p6 }
  0x3b   :  { %4804 = shalt.err (!%p4801_p10)
}
  0x3c   :  { %55 = dma.hbm_to_vmem [thread:$0]  %s5142_s2, 96, %s53_s16, [#allocation6]  }
  0x3d   :  { %s4813_s21 = scalar_lea.vmem %s76_s18, 10240  ;;  %p4818_p12 = scmp.lt.s32.totalorder %s76_s18, %s76_s18 }
  0x3e   :  { %p4814_p11 = scmp.ne.s32.totalorder %s76_s18, %s4813_s21  ;;  %p4819_p13 = scmp.lt.s32.totalorder %s4813_s21, %s4813_s21 }
  0x40   :  { %p4820_p0 = por %p4819_p13, %p4818_p12 }
  0x42   :  { %p4821_p1 = pnand %p4820_p0, %p4814_p11 }
  0x44   :  { %4824 = shalt.err (!%p4821_p1)
}
  0x45   :  { %81 = dma.hbm_to_vmem [thread:$0]  %s5145_s5, 10240, %s76_s18, [#allocation9], %s4905_s26, %s4905_s26, %s4906_s27  }
  0x46   :  { %s4909_s23 = smov [#allocation13]  }
  0x47   :  { %s103_s24 = sshll.u32 %s4909_s23, 4  ;;  %s104_s24 = int_to_ptr.vmem [resolvable:$true] %s103_s24 }
  0x48   :  { %s4833_s1 = scalar_lea.vmem %s104_s24, 2048  ;;  %p4838_p3 = scmp.lt.s32.totalorder %s104_s24, %s104_s24 }
  0x49   :  { %p4834_p2 = scmp.ne.s32.totalorder %s104_s24, %s4833_s1  ;;  %p4839_p4 = scmp.lt.s32.totalorder %s4833_s1, %s4833_s1 }
  0x4b   :  { %p4840_p5 = por %p4839_p4, %p4838_p3 }
  0x4d   :  { %p4841_p6 = pnand %p4840_p5, %p4834_p2 }
  0x4f   :  { %4844 = shalt.err (!%p4841_p6)
}
  0x50   :  { %s4910_s2 = smov 64   ;;  %s4911_s25 = smov 4  }
  0x51   :  { %109 = dma.hbm_to_vmem [thread:$0]  %s5149_s9, 2048, %s104_s24, [#allocation12], %s4910_s2, %s4910_s2, %s4911_s25  }
  0x52   :  { %s4912_s29 = smov [#allocation14]  }
  0x53   :  { %s117_s30 = sshll.u32 %s4912_s29, 4  ;;  %s118_s30 = int_to_ptr.vmem [resolvable:$true] %s117_s30 }
  0x54   :  { %s4853_s5 = scalar_lea.vmem %s118_s30, 1024  ;;  %p4858_p8 = scmp.lt.s32.totalorder %s118_s30, %s118_s30 }
  0x55   :  { %p4854_p7 = scmp.ne.s32.totalorder %s118_s30, %s4853_s5  ;;  %p4859_p9 = scmp.lt.s32.totalorder %s4853_s5, %s4853_s5 }
  0x57   :  { %p4860_p10 = por %p4859_p9, %p4858_p8 }
  0x59   :  { %p4861_p11 = pnand %p4860_p10, %p4854_p7 }
  0x5b   :  { %4864 = shalt.err (!%p4861_p11)
}
  0x5c   :  { %123 = dma.hbm_to_vmem [thread:$0]  %s5151_s11, 1024, %s118_s30, [#allocation15], %s4910_s2, %s4910_s2, %s4911_s25  }
  0x5d   :  { %4885 = dma.done.wait [#allocation3], 128  }
  0x5e   :  { %4886 = vsyncadd [#allocation3], 4294967168 }
  0x5f   :  { %4887 = dma.done.wait [#allocation6], 3168  }
  0x60   :  { %4888 = vsyncadd [#allocation6], 4294964128 }
  0x61   :  { %4889 = dma.done.wait [#allocation9], 40960  }
  0x62   :  { %4890 = vsyncadd [#allocation9], 4294926336 }
  0x63   :  { %4891 = dma.done.wait [#allocation12], 6144  }
  0x64   :  { %4892 = vsyncadd [#allocation12], 4294961152 }
  0x65   :  { %4893 = dma.done.wait [#allocation15], 1024  }
  0x66   :  { %4894 = vsyncadd [#allocation15], 4294966272  ;;  %v4913_v0 = vmov 0   ;;  %vm327_vm0 = vcmask 1044480   ;;  %v4147_v5 = vld [vmem:[#allocation5 + $0x64] ss:$24 sps:$4 sm:$0xff]  }
  0x67   :  { %378 = vmatprep.mubr.bf16.mxu0 %v4913_v0  ;;  %419 = vmatprep.mubr.bf16.mxu1 %v4913_v0  ;;  %v4141_v1 = vld [vmem:[#allocation5 + $0x94] ss:$24 sps:$4 sm:$0x1f]   ;;  %v4145_v3 = vld [vmem:[#allocation5 + $0x90] ss:$24 sps:$4 sm:$0x1f]  }
  0x68   :  { %v4143_v2 = vld [vmem:[#allocation5 + $0x9c] ss:$24 sps:$4 sm:$0x1f]   ;;  %3620 = vmatprep.subr.msk.bf16.mxu0 %vm327_vm0, %v4141_v1  ;;  %v4146_v4 = vld [vmem:[#allocation5 + $0x98] ss:$24 sps:$4 sm:$0x1f]  }
  0x69   :  { %3622 = vmatprep.subr.msk.bf16.mxu1 %vm327_vm0, %v4143_v2  ;;  %v329_v6 = vsel %vm327_vm0, %v4145_v3, 0  ;;  %v335_v7 = vsel %vm327_vm0, %v4146_v4, 0  ;;  %v4149_v8 = vld [vmem:[#allocation5 + $0x6c] ss:$24 sps:$4 sm:$0xff]   ;;  %v4151_v9 = vld [vmem:[#allocation5 + $0x60] ss:$24 sps:$4 sm:$0xff]  }
  0x6a   :  { %355 = vmatpush1.bf16.msra.mxu0 %v329_v6  ;;  %396 = vmatpush1.bf16.msra.mxu1 %v335_v7  ;;  %v4152_v10 = vld [vmem:[#allocation5 + $0x68] ss:$24 sps:$4 sm:$0xff]   ;;  %v4153_v11 = vld [vmem:[#allocation5 + $0x34] ss:$24 sps:$4 sm:$0xff]   ;;  %v4158_v14 = vld [vmem:[#allocation5 + $0x38] ss:$24 sps:$4 sm:$0xff]  }
  0x6b   :  { %356 = vmatprep.subr.bf16.mxu0 %v4147_v5  ;;  %397 = vmatprep.subr.bf16.mxu1 %v4149_v8  ;;  %v4155_v12 = vld [vmem:[#allocation5 + $0x3c] ss:$24 sps:$4 sm:$0xff]   ;;  %v4157_v13 = vld [vmem:[#allocation5 + $0x30] ss:$24 sps:$4 sm:$0xff]   ;;  %v4161_v16 = vld [vmem:[#allocation5 + $0xc] ss:$24 sps:$4 sm:$0xff]  }
  0x6c   :  { %v4159_v15 = vld [vmem:[#allocation5 + $0x4] ss:$24 sps:$4 sm:$0xff]   ;;  %v4163_v17 = vld [vmem:[#allocation5] ss:$24 sps:$4 sm:$0xff]   ;;  %vm323_vm1 = vcmask 474112   ;;  %vm4915_vm2 = vmmov 0  }
  0x6d   :  { %v4164_v18 = vld [vmem:[#allocation5 + $0x8] ss:$24 sps:$4 sm:$0xff]   ;;  %v151_v19 = vld [vmem:[#allocation2] sm:$0xff]  ;;  %v4170_v23 = vld [vmem:[#allocation5 + $0x74] ss:$24 sps:$4 sm:$0xff]   ;;  %s4916_s19 = smov [#allocation16]  }
  0x6e   :  { %357 = vmatpush1.bf16.msra.mxu0 %v4151_v9  ;;  %398 = vmatpush1.bf16.msra.mxu1 %v4152_v10  ;;  %v4165_v20 = vld [vmem:[#allocation5 + $0xa4] ss:$24 sps:$4 sm:$0x1f]   ;;  %v4167_v21 = vld [vmem:[#allocation5 + $0xa0] ss:$24 sps:$4 sm:$0x1f]   ;;  %v152_v22 = vpack.c.bf16 %v151_v19, %v151_v19 }
  0x6f   :  { %358 = vmatprep.subr.bf16.mxu0 %v4153_v11  ;;  %399 = vmatprep.subr.bf16.mxu1 %v4155_v12  ;;  %v341_v24 = vsel %vm327_vm0, %v4167_v21, 0  ;;  %v4179_v25 = vld [vmem:[#allocation8 + $0x11c] ss:$20 sps:$4 sm:$0xff]   ;;  %v4177_v26 = vld [vmem:[#allocation8 + $0x118] ss:$20 sps:$4 sm:$0xff]   ;;  %s3583_s7 = sshll.u32 %s4916_s19, 4  ;;  %s3584_s7 = int_to_ptr.vmem [resolvable:$true] %s3583_s7 }
  0x70   :  { %v4185_v27 = vld [vmem:[#allocation8 + $0xf4] ss:$20 sps:$4 sm:$0xff]   ;;  %v4183_v30 = vld [vmem:[#allocation8 + $0xf0] ss:$20 sps:$4 sm:$0xff]   ;;  %v4191_v31 = vld [vmem:[#allocation8 + $0xcc] ss:$20 sps:$4 sm:$0xff]   ;;  %p4870_p13 = scmp.lt.s32.totalorder %s3584_s7, %s3584_s7 }
  0x71   :  { %v4168_v28 = vld [vmem:[#allocation5 + $0x70] ss:$24 sps:$4 sm:$0xff]   ;;  %v4173_v29 = vld [vmem:[#allocation5 + $0x44] ss:$24 sps:$4 sm:$0xff]   ;;  %v4171_v32 = vld [vmem:[#allocation5 + $0x40] ss:$24 sps:$4 sm:$0xff]  }
  0x72   :  { %359 = vmatpush1.bf16.msra.mxu0 %v4157_v13  ;;  %400 = vmatpush1.bf16.msra.mxu1 %v4158_v14  ;;  %v4176_v33 = vld [vmem:[#allocation5 + $0x14] ss:$24 sps:$4 sm:$0xff]   ;;  %v4174_v36 = vld [vmem:[#allocation5 + $0x10] ss:$24 sps:$4 sm:$0xff]  }
  0x73   :  { %360 = vmatprep.subr.bf16.mxu0 %v4159_v15  ;;  %401 = vmatprep.subr.bf16.mxu1 %v4161_v16  ;;  %v4189_v34 = vld [vmem:[#allocation8 + $0xc8] ss:$20 sps:$4 sm:$0xff]   ;;  %v4197_v35 = vld [vmem:[#allocation8 + $0xa4] ss:$20 sps:$4 sm:$0xff]   ;;  %v4195_v38 = vld [vmem:[#allocation8 + $0xa0] ss:$20 sps:$4 sm:$0xff]  }
  0x74   :  { %v4182_v37 = vld [vmem:[#allocation8 + $0x39c] ss:$20 sps:$4 sm:$0xff]   ;;  %v4180_v40 = vld [vmem:[#allocation8 + $0x398] ss:$20 sps:$4 sm:$0xff]   ;;  %v4188_v41 = vld [vmem:[#allocation8 + $0x374] ss:$20 sps:$4 sm:$0xff]  }
  0x75   :  { %v4203_v39 = vld [vmem:[#allocation8 + $0x7c] ss:$20 sps:$4 sm:$0xff]   ;;  %v4201_v42 = vld [vmem:[#allocation8 + $0x78] ss:$20 sps:$4 sm:$0xff]   ;;  %v4209_v43 = vld [vmem:[#allocation8 + $0x54] ss:$20 sps:$4 sm:$0xff]  }
  0x76   :  { %361 = vmatpush1.bf16.msra.mxu0 %v4163_v17  ;;  %402 = vmatpush1.bf16.msra.mxu1 %v4164_v18  ;;  %v4186_v44 = vld [vmem:[#allocation8 + $0x370] ss:$20 sps:$4 sm:$0xff]   ;;  %v4194_v45 = vld [vmem:[#allocation8 + $0x34c] ss:$20 sps:$4 sm:$0xff]   ;;  %v4192_v48 = vld [vmem:[#allocation8 + $0x348] ss:$20 sps:$4 sm:$0xff]  }
  0x77   :  { %3624 = vmatprep.subr.msk.bf16.mxu0 %vm327_vm0, %v4165_v20  ;;  %2044 = vmatprep.subr.bf16.mxu1 %v4179_v25  ;;  %v4207_v46 = vld [vmem:[#allocation8 + $0x50] ss:$20 sps:$4 sm:$0xff]   ;;  %v4215_v47 = vld [vmem:[#allocation8 + $0x2c] ss:$20 sps:$4 sm:$0xff]   ;;  %v4213_v50 = vld [vmem:[#allocation8 + $0x28] ss:$20 sps:$4 sm:$0xff]  }
  0x78   :  { %v4200_v49 = vld [vmem:[#allocation8 + $0x324] ss:$20 sps:$4 sm:$0xff]   ;;  %v4198_v52 = vld [vmem:[#allocation8 + $0x320] ss:$20 sps:$4 sm:$0xff]   ;;  %v4206_v53 = vld [vmem:[#allocation8 + $0x2fc] ss:$20 sps:$4 sm:$0xff]  }
  0x79   :  { %3621 = vmatmul.mubr.msk.bf16.vlgmr.msra.gmra.mxu0 %vm323_vm1, %v152_v22  ;;  %3623 = vmatmul.mubr.msk.bf16.vlgmr.msra.gmra.mxu1 %vm323_vm1, %v152_v22  ;;  %v4221_v51 = vld [vmem:[#allocation8 + $0x4] ss:$20 sps:$4 sm:$0xff]   ;;  %v4219_v54 = vld [vmem:[#allocation8] ss:$20 sps:$4 sm:$0xff]   ;;  %v4227_v55 = vld [vmem:[#allocation8 + $0x25c] ss:$20 sps:$4 sm:$0xff]  }
  0x7a   :  { %437 = vmatpush1.bf16.msra.mxu0 %v341_v24  ;;  %460 = vmatprep.mubr.bf16.mxu0 %v4913_v0  ;;  %v4204_v56 = vld [vmem:[#allocation8 + $0x2f8] ss:$20 sps:$4 sm:$0xff]   ;;  %v4212_v57 = vld [vmem:[#allocation8 + $0x2d4] ss:$20 sps:$4 sm:$0xff]   ;;  %v4210_v59 = vld [vmem:[#allocation8 + $0x2d0] ss:$20 sps:$4 sm:$0xff]  }
  0x7b   :  { %438 = vmatprep.subr.bf16.mxu0 %v4170_v23  ;;  %2045 = vmatpush1.bf16.msra.mxu1 %v4177_v26  ;;  %v4225_v58 = vld [vmem:[#allocation8 + $0x258] ss:$20 sps:$4 sm:$0xff]   ;;  %v4233_v60 = vld [vmem:[#allocation8 + $0x234] ss:$20 sps:$4 sm:$0xff]   ;;  %v4231_v62 = vld [vmem:[#allocation8 + $0x230] ss:$20 sps:$4 sm:$0xff]  }
  0x7c   :  { %2046 = vmatprep.subr.bf16.mxu1 %v4185_v27  ;;  %v4218_v61 = vld [vmem:[#allocation8 + $0x2ac] ss:$20 sps:$4 sm:$0xff]   ;;  %v4216_v1 = vld [vmem:[#allocation8 + $0x2a8] ss:$20 sps:$4 sm:$0xff]   ;;  %v4224_v2 = vld [vmem:[#allocation8 + $0x284] ss:$20 sps:$4 sm:$0xff]  }
  0x7d   :  { %v4239_v63 = vld [vmem:[#allocation8 + $0x20c] ss:$20 sps:$4 sm:$0xff]   ;;  %v4237_v3 = vld [vmem:[#allocation8 + $0x208] ss:$20 sps:$4 sm:$0xff]   ;;  %v4245_v4 = vld [vmem:[#allocation8 + $0x1e4] ss:$20 sps:$4 sm:$0xff]  }
  0x7e   :  { %439 = vmatpush1.bf16.msra.mxu0 %v4168_v28  ;;  %v4222_v5 = vld [vmem:[#allocation8 + $0x280] ss:$20 sps:$4 sm:$0xff]   ;;  %v4230_v6 = vld [vmem:[#allocation8 + $0x4dc] ss:$20 sps:$4 sm:$0xff]   ;;  %v4228_v9 = vld [vmem:[#allocation8 + $0x4d8] ss:$20 sps:$4 sm:$0xff]  }
  0x7f   :  { %440 = vmatprep.subr.bf16.mxu0 %v4173_v29  ;;  %2047 = vmatpush1.bf16.msra.mxu1 %v4183_v30  ;;  %v4243_v7 = vld [vmem:[#allocation8 + $0x1e0] ss:$20 sps:$4 sm:$0xff]   ;;  %v4251_v8 = vld [vmem:[#allocation8 + $0x1bc] ss:$20 sps:$4 sm:$0xff]   ;;  %v4249_v11 = vld [vmem:[#allocation8 + $0x1b8] ss:$20 sps:$4 sm:$0xff]  }
  0x80   :  { %2048 = vmatprep.subr.bf16.mxu1 %v4191_v31  ;;  %v4236_v10 = vld [vmem:[#allocation8 + $0x4b4] ss:$20 sps:$4 sm:$0xff]   ;;  %v4234_v13 = vld [vmem:[#allocation8 + $0x4b0] ss:$20 sps:$4 sm:$0xff]   ;;  %v4242_v14 = vld [vmem:[#allocation8 + $0x48c] ss:$20 sps:$4 sm:$0xff]  }
  0x81   :  { %v4257_v12 = vld [vmem:[#allocation8 + $0x194] ss:$20 sps:$4 sm:$0xff]   ;;  %v4255_v15 = vld [vmem:[#allocation8 + $0x190] ss:$20 sps:$4 sm:$0xff]   ;;  %v4252_v20 = vld [vmem:[#allocation8 + $0x438] ss:$20 sps:$4 sm:$0xff]  }
  0x82   :  { %441 = vmatpush1.bf16.msra.mxu0 %v4171_v32  ;;  %v4240_v16 = vld [vmem:[#allocation8 + $0x488] ss:$20 sps:$4 sm:$0xff]   ;;  %v4248_v17 = vld [vmem:[#allocation8 + $0x464] ss:$20 sps:$4 sm:$0xff]   ;;  %v4246_v18 = vld [vmem:[#allocation8 + $0x460] ss:$20 sps:$4 sm:$0xff]  }
  0x83   :  { %442 = vmatprep.subr.bf16.mxu0 %v4176_v33  ;;  %2049 = vmatpush1.bf16.msra.mxu1 %v4189_v34  ;;  %v4254_v19 = vld [vmem:[#allocation8 + $0x43c] ss:$20 sps:$4 sm:$0xff]   ;;  %v4260_v21 = vld [vmem:[#allocation8 + $0x414] ss:$20 sps:$4 sm:$0xff]   ;;  %v4263_v23 = vld [vmem:[#allocation8 + $0x16c] ss:$20 sps:$4 sm:$0xff]   ;;  %v179_v33 = vlaneseq }
  0x84   :  { %2050 = vmatprep.subr.bf16.mxu1 %v4197_v35  ;;  %v4261_v24 = vld [vmem:[#allocation8 + $0x168] ss:$20 sps:$4 sm:$0xff]   ;;  %v4266_v25 = vld [vmem:[#allocation8 + $0x3ec] ss:$20 sps:$4 sm:$0xff]   ;;  %v4269_v27 = vld [vmem:[#allocation8 + $0x144] ss:$20 sps:$4 sm:$0xff]  }
  0x85   :  { %v4264_v26 = vld [vmem:[#allocation8 + $0x3e8] ss:$20 sps:$4 sm:$0xff]   ;;  %v4267_v28 = vld [vmem:[#allocation8 + $0x140] ss:$20 sps:$4 sm:$0xff]   ;;  %v4272_v29 = vld [vmem:[#allocation8 + $0x3c4] ss:$20 sps:$4 sm:$0xff]  }
  0x86   :  { %443 = vmatpush1.bf16.msra.mxu0 %v4174_v36  ;;  %v4275_v30 = vld [vmem:[#allocation8 + $0x61c] ss:$20 sps:$4 sm:$0xff]   ;;  %v4270_v31 = vld [vmem:[#allocation8 + $0x3c0] ss:$20 sps:$4 sm:$0xff]   ;;  %v4278_v32 = vld [vmem:[#allocation8 + $0x124] ss:$20 sps:$4 sm:$0xff]  }
  0x87   :  { %2085 = vmatprep.subr.bf16.mxu0 %v4182_v37  ;;  %2051 = vmatpush1.bf16.msra.mxu1 %v4195_v38  ;;  %v5029_v34 = vshrl.u32 %v179_v33, 7  ;;  %v5031_v35 = vld [vmem:[#allocation7] sm:$0x3f]  ;;  %v4314_v33 = vld [vmem:[#allocation8 + $0x34] ss:$20 sps:$4 sm:$0xff]  }
  0x88   :  { %2052 = vmatprep.subr.bf16.mxu1 %v4203_v39 }
  0x89   :  { %3625 = vmatmul.mubr.msk.bf16.vlgmr.msra.gmra.mxu0 %vm323_vm1, %v152_v22  ;;  %v4258_v22 = vld [vmem:[#allocation8 + $0x410] ss:$20 sps:$4 sm:$0xff]   ;;  %v5034_v36 = vsub.s32 0, %v5029_v34  ;;  %v189_v37 = vsub.s32 2, %v5029_v34  ;;  %v5038_v38 = vsub.s32 1, %v5029_v34  ;;  %v193_v39 = vsub.s32 3, %v5029_v34 }
  0x8a   :  { %2086 = vmatpush1.bf16.msra.mxu0 %v4180_v40 }
  0x8b   :  { %2087 = vmatprep.subr.bf16.mxu0 %v4188_v41  ;;  %2053 = vmatpush1.bf16.msra.mxu1 %v4201_v42  ;;  %v182_v40 = vrot.slane %v5031_v35, %v5034_v36  ;;  %v190_v41 = vrot.slane %v5031_v35, %v189_v37  ;;  %v186_v42 = vrot.slane %v5031_v35, %v5038_v38 }
  0x8c   :  { %2054 = vmatprep.subr.bf16.mxu1 %v4209_v43  ;;  %v194_v43 = vrot.slane %v5031_v35, %v193_v39 }
  0x8e   :  { %2088 = vmatpush1.bf16.msra.mxu0 %v4186_v44 }
  0x8f   :  { %2089 = vmatprep.subr.bf16.mxu0 %v4194_v45  ;;  %2055 = vmatpush1.bf16.msra.mxu1 %v4207_v46 }
  0x90   :  { %2056 = vmatprep.subr.bf16.mxu1 %v4215_v47 }
  0x92   :  { %2090 = vmatpush1.bf16.msra.mxu0 %v4192_v48 }
  0x93   :  { %2091 = vmatprep.subr.bf16.mxu0 %v4200_v49  ;;  %2057 = vmatpush1.bf16.msra.mxu1 %v4213_v50 }
  0x94   :  { %2058 = vmatprep.subr.bf16.mxu1 %v4221_v51 }
  0x96   :  { %2092 = vmatpush1.bf16.msra.mxu0 %v4198_v52 }
  0x97   :  { %2093 = vmatprep.subr.bf16.mxu0 %v4206_v53  ;;  %2059 = vmatpush1.bf16.msra.mxu1 %v4219_v54 }
  0x98   :  { %2060 = vmatprep.subr.bf16.mxu1 %v4227_v55 }
  0x9a   :  { %2094 = vmatpush1.bf16.msra.mxu0 %v4204_v56 }
  0x9b   :  { %2095 = vmatprep.subr.bf16.mxu0 %v4212_v57  ;;  %2061 = vmatpush2.bf16.msra.mxu1 %v4225_v58  ;;  %v4273_v58 = vld [vmem:[#allocation8 + $0x618] ss:$20 sps:$4 sm:$0xff]  }
  0x9c   :  { %2062 = vmatprep.subr.bf16.mxu1 %v4233_v60 }
  0x9e   :  { %2096 = vmatpush1.bf16.msra.mxu0 %v4210_v59  ;;  %v4276_v59 = vld [vmem:[#allocation8 + $0x120] ss:$20 sps:$4 sm:$0xff]  }
  0x9f   :  { %2097 = vmatprep.subr.bf16.mxu0 %v4218_v61  ;;  %2063 = vmatpush2.bf16.msra.mxu1 %v4231_v62  ;;  %v4281_v62 = vld [vmem:[#allocation8 + $0x5f4] ss:$20 sps:$4 sm:$0xff]  }
  0xa0   :  { %2064 = vmatprep.subr.bf16.mxu1 %v4239_v63 }
  0xa2   :  { %2098 = vmatpush1.bf16.msra.mxu0 %v4216_v1 }
  0xa3   :  { %2099 = vmatprep.subr.bf16.mxu0 %v4224_v2  ;;  %2065 = vmatpush2.bf16.msra.mxu1 %v4237_v3 }
  0xa4   :  { %2066 = vmatprep.subr.bf16.mxu1 %v4245_v4  ;;  %v4279_v4 = vld [vmem:[#allocation8 + $0x5f0] ss:$20 sps:$4 sm:$0xff]  }
  0xa6   :  { %2100 = vmatpush1.bf16.msra.mxu0 %v4222_v5  ;;  %v4282_v5 = vld [vmem:[#allocation8 + $0xf8] ss:$20 sps:$4 sm:$0xff]  }
  0xa7   :  { %2101 = vmatprep.subr.bf16.mxu0 %v4230_v6  ;;  %2067 = vmatpush2.bf16.msra.mxu1 %v4243_v7  ;;  %v4284_v6 = vld [vmem:[#allocation8 + $0xfc] ss:$20 sps:$4 sm:$0xff]   ;;  %v4287_v7 = vld [vmem:[#allocation8 + $0x5cc] ss:$20 sps:$4 sm:$0xff]  }
  0xa8   :  { %2068 = vmatprep.subr.bf16.mxu1 %v4251_v8  ;;  %v4290_v8 = vld [vmem:[#allocation8 + $0xd4] ss:$20 sps:$4 sm:$0xff]  }
  0xaa   :  { %2102 = vmatpush2.bf16.msra.mxu0 %v4228_v9  ;;  %v201_v9 = vsub.s32 5, %v5029_v34 }
  0xab   :  { %2103 = vmatprep.subr.bf16.mxu0 %v4236_v10  ;;  %2069 = vmatpush2.bf16.msra.mxu1 %v4249_v11  ;;  %v4285_v10 = vld [vmem:[#allocation8 + $0x5c8] ss:$20 sps:$4 sm:$0xff]   ;;  %v4288_v11 = vld [vmem:[#allocation8 + $0xd0] ss:$20 sps:$4 sm:$0xff]  }
  0xac   :  { %2070 = vmatprep.subr.bf16.mxu1 %v4257_v12  ;;  %v202_v12 = vrot.slane %v5031_v35, %v201_v9  ;;  %v4356_v9 = vld [vmem:[#allocation8 + $0x19c] ss:$20 sps:$4 sm:$0xff]  }
  0xae   :  { %2104 = vmatpush2.bf16.msra.mxu0 %v4234_v13  ;;  %v4293_v13 = vld [vmem:[#allocation8 + $0x5a4] ss:$20 sps:$4 sm:$0xff]  }
  0xaf   :  { %2105 = vmatprep.subr.bf16.mxu0 %v4242_v14  ;;  %2071 = vmatpush2.bf16.msra.mxu1 %v4255_v15  ;;  %v4296_v14 = vld [vmem:[#allocation8 + $0xac] ss:$20 sps:$4 sm:$0xff]  }
  0xb0   :  { %2072 = vmatprep.subr.bf16.mxu1 %v4263_v23  ;;  %v4297_v23 = vld [vmem:[#allocation8 + $0x578] ss:$20 sps:$4 sm:$0xff]  }
  0xb2   :  { %2106 = vmatpush2.bf16.msra.mxu0 %v4240_v16 }
  0xb3   :  { %2107 = vmatprep.subr.bf16.mxu0 %v4248_v17  ;;  %2073 = vmatpush2.bf16.msra.mxu1 %v4261_v24  ;;  %v4291_v17 = vld [vmem:[#allocation8 + $0x5a0] ss:$20 sps:$4 sm:$0xff]  }
  0xb4   :  { %2074 = vmatprep.subr.bf16.mxu1 %v4269_v27 }
  0xb6   :  { %2108 = vmatpush2.bf16.msra.mxu0 %v4246_v18  ;;  %v4294_v18 = vld [vmem:[#allocation8 + $0xa8] ss:$20 sps:$4 sm:$0xff]  }
  0xb7   :  { %2109 = vmatprep.subr.bf16.mxu0 %v4254_v19  ;;  %2075 = vmatpush2.bf16.msra.mxu1 %v4267_v28  ;;  %v4305_v28 = vld [vmem:[#allocation8 + $0x554] ss:$20 sps:$4 sm:$0xff]  }
  0xb8   :  { %2126 = vmatprep.subr.bf16.mxu1 %v4275_v30  ;;  %v4303_v30 = vld [vmem:[#allocation8 + $0x550] ss:$20 sps:$4 sm:$0xff]  }
  0xba   :  { %2110 = vmatpush2.bf16.msra.mxu0 %v4252_v20  ;;  %v4299_v20 = vld [vmem:[#allocation8 + $0x57c] ss:$20 sps:$4 sm:$0xff]  }
  0xbb   :  { %2111 = vmatprep.subr.bf16.mxu0 %v4260_v21  ;;  %v4302_v21 = vld [vmem:[#allocation8 + $0x84] ss:$20 sps:$4 sm:$0xff]  }
  0xbe   :  { %2112 = vmatpush2.bf16.msra.mxu0 %v4258_v22 }
  0xbf   :  { %2113 = vmatprep.subr.bf16.mxu0 %v4266_v25 }
  0xc2   :  { %2114 = vmatpush2.bf16.msra.mxu0 %v4264_v26  ;;  %v4300_v26 = vld [vmem:[#allocation8 + $0x80] ss:$20 sps:$4 sm:$0xff]  }
  0xc3   :  { %2115 = vmatprep.subr.bf16.mxu0 %v4272_v29  ;;  %v4308_v29 = vld [vmem:[#allocation8 + $0x5c] ss:$20 sps:$4 sm:$0xff]  }
  0xc6   :  { %2116 = vmatpush2.bf16.msra.mxu0 %v4270_v31  ;;  %v4306_v31 = vld [vmem:[#allocation8 + $0x58] ss:$20 sps:$4 sm:$0xff]  }
  0xc7   :  { %2167 = vmatprep.subr.bf16.mxu0 %v4278_v32  ;;  %v4311_v32 = vld [vmem:[#allocation8 + $0x52c] ss:$20 sps:$4 sm:$0xff]  }
 0x139   :  { %v380_v44 = vpop.f32.mrf.mxu0  ;;  %v421_v45 = vpop.f32.mrf.mxu1 }
 0x13a   :  { %v381_v46 = vadd.f32 %v380_v44, %v182_v40  ;;  %v422_v47 = vadd.f32 %v421_v45, %v190_v41  ;;  %v4309_v40 = vld [vmem:[#allocation8 + $0x528] ss:$20 sps:$4 sm:$0xff]   ;;  %v4312_v41 = vld [vmem:[#allocation8 + $0x30] ss:$20 sps:$4 sm:$0xff]   ;;  %v4315_v44 = vld [vmem:[#allocation8 + $0x500] ss:$20 sps:$4 sm:$0xff]  }
 0x13b   :  { %v382_v48 = vpop.f32.mrf.mxu0  ;;  %v423_v49 = vpop.f32.mrf.mxu1  ;;  %v4318_v45 = vld [vmem:[#allocation8 + $0x8] ss:$20 sps:$4 sm:$0xff]  }
 0x13c   :  { %v471_v50 = vmax.f32 %v422_v47, 0.0  ;;  %v383_v51 = vadd.f32 %v382_v48, %v186_v42  ;;  %v424_v52 = vadd.f32 %v423_v49, %v194_v43  ;;  %v469_v53 = vmax.f32 %v381_v46, 0.0  ;;  %v4317_v42 = vld [vmem:[#allocation8 + $0x504] ss:$20 sps:$4 sm:$0xff]   ;;  %v4320_v43 = vld [vmem:[#allocation8 + $0xc] ss:$20 sps:$4 sm:$0xff]  }
 0x13d   :  { %v384_v54 = vpop.f32.mrf.mxu0  ;;  %v425_v55 = vpop.f32.mrf.mxu1  ;;  %v4323_v46 = vld [vmem:[#allocation8 + $0x75c] ss:$20 sps:$4 sm:$0xff]   ;;  %v4326_v47 = vld [vmem:[#allocation8 + $0x264] ss:$20 sps:$4 sm:$0xff]   ;;  %v4324_v49 = vld [vmem:[#allocation8 + $0x260] ss:$20 sps:$4 sm:$0xff]  }
 0x13e   :  { %v470_v56 = vmax.f32 %v383_v51, 0.0  ;;  %v472_v57 = vmax.f32 %v424_v52, 0.0  ;;  %v5051_v60 = vpack.c.bf16 %v471_v50, %v471_v50  ;;  %v5057_v3 = vpack.c.bf16 %v469_v53, %v469_v53  ;;  %v4321_v48 = vld [vmem:[#allocation8 + $0x758] ss:$20 sps:$4 sm:$0xff]   ;;  %v4329_v50 = vld [vmem:[#allocation8 + $0x734] ss:$20 sps:$4 sm:$0xff]  }
 0x13f   :  { %v385_v61 = vpop.f32.mrf.mxu0  ;;  %v426_v63 = vpop.f32.mrf.mxu1  ;;  %v4332_v51 = vld [vmem:[#allocation8 + $0x23c] ss:$20 sps:$4 sm:$0xff]   ;;  %v4330_v53 = vld [vmem:[#allocation8 + $0x238] ss:$20 sps:$4 sm:$0xff]   ;;  %v4338_v55 = vld [vmem:[#allocation8 + $0x214] ss:$20 sps:$4 sm:$0xff]  }
 0x140   :  { %v5053_v1 = vpack.c.bf16 %v470_v56, %v470_v56  ;;  %v5055_v2 = vpack.c.bf16 %v472_v57, %v472_v57  ;;  %v4327_v52 = vld [vmem:[#allocation8 + $0x730] ss:$20 sps:$4 sm:$0xff]   ;;  %v4335_v54 = vld [vmem:[#allocation8 + $0x70c] ss:$20 sps:$4 sm:$0xff]   ;;  %v4333_v56 = vld [vmem:[#allocation8 + $0x708] ss:$20 sps:$4 sm:$0xff]  }
 0x141   :  { %v4336_v57 = vld [vmem:[#allocation8 + $0x210] ss:$20 sps:$4 sm:$0xff]   ;;  %v4339_v61 = vld [vmem:[#allocation8 + $0x6e0] ss:$20 sps:$4 sm:$0xff]  }
 0x142   :  { %2076 = vmatprep.mubr.bf16.mxu1 %v5053_v1  ;;  %2117 = vmatprep.mubr.bf16.mxu0 %v5055_v2  ;;  %v4347_v63 = vld [vmem:[#allocation8 + $0x6bc] ss:$20 sps:$4 sm:$0xff]  }
 0x143   :  { %2077 = vmatmul.mubr.bf16.vlgmr.msra.gmra.mxu1 %v5057_v3  ;;  %2118 = vmatmul.mubr.bf16.vlgmr.msra.gmra.mxu0 %v5051_v60 }
 0x144   :  { %2127 = vmatpush1.bf16.msra.mxu1 %v4273_v58  ;;  %2168 = vmatpush1.bf16.msra.mxu0 %v4276_v59  ;;  %v4341_v58 = vld [vmem:[#allocation8 + $0x6e4] ss:$20 sps:$4 sm:$0xff]   ;;  %v4344_v59 = vld [vmem:[#allocation8 + $0x1ec] ss:$20 sps:$4 sm:$0xff]  }
 0x145   :  { %2199 = vmatprep.mubr.bf16.mxu0 %v5053_v1  ;;  %2128 = vmatprep.subr.bf16.mxu1 %v4281_v62  ;;  %v4342_v62 = vld [vmem:[#allocation8 + $0x1e8] ss:$20 sps:$4 sm:$0xff]  }
 0x146   :  { %2169 = vmatprep.subr.bf16.mxu0 %v4284_v6  ;;  %v4348_v6 = vld [vmem:[#allocation8 + $0x1c0] ss:$20 sps:$4 sm:$0xff]  }
 0x148   :  { %2129 = vmatpush1.bf16.msra.mxu1 %v4279_v4  ;;  %2170 = vmatpush1.bf16.msra.mxu0 %v4282_v5  ;;  %v4350_v4 = vld [vmem:[#allocation8 + $0x1c4] ss:$20 sps:$4 sm:$0xff]  }
 0x149   :  { %2130 = vmatprep.subr.bf16.mxu1 %v4287_v7  ;;  %2171 = vmatprep.subr.bf16.mxu0 %v4290_v8  ;;  %v5066_v15 = vpop.f32.mrf.mxu0  ;;  %v4345_v5 = vld [vmem:[#allocation8 + $0x6b8] ss:$20 sps:$4 sm:$0xff]   ;;  %v197_v7 = vsub.s32 4, %v5029_v34  ;;  %v4353_v8 = vld [vmem:[#allocation8 + $0x694] ss:$20 sps:$4 sm:$0xff]  }
 0x14a   :  { %v4636_v34 = vld [vmem:[#allocation11 + $0x60] ss:$8 sps:$4 sm:$0xff]  }
 0x14b   :  { %v464_v16 = vpop.f32.mrf.mxu0 }
 0x14c   :  { %2131 = vmatpush1.bf16.msra.mxu1 %v4285_v10  ;;  %2172 = vmatpush1.bf16.msra.mxu0 %v4288_v11  ;;  %v465_v19 = vadd.f32 %v464_v16, %v202_v12  ;;  %v4351_v10 = vld [vmem:[#allocation8 + $0x690] ss:$20 sps:$4 sm:$0xff]   ;;  %v4354_v11 = vld [vmem:[#allocation8 + $0x198] ss:$20 sps:$4 sm:$0xff]   ;;  %v198_v12 = vrot.slane %v5031_v35, %v197_v7  ;;  %v4357_v16 = vld [vmem:[#allocation8 + $0x668] ss:$20 sps:$4 sm:$0xff]  }
 0x14d   :  { %2132 = vmatprep.subr.bf16.mxu1 %v4293_v13  ;;  %2173 = vmatprep.subr.bf16.mxu0 %v4296_v14  ;;  %v466_v22 = vpop.f32.mrf.mxu0  ;;  %v4359_v13 = vld [vmem:[#allocation8 + $0x66c] ss:$20 sps:$4 sm:$0xff]   ;;  %v4362_v14 = vld [vmem:[#allocation8 + $0x174] ss:$20 sps:$4 sm:$0xff]   ;;  %v4371_v35 = vld [vmem:[#allocation8 + $0x3a4] ss:$20 sps:$4 sm:$0xff]  }
 0x14e   :  { %v474_v24 = vmax.f32 %v465_v19, 0.0  ;;  %v4365_v19 = vld [vmem:[#allocation8 + $0x644] ss:$20 sps:$4 sm:$0xff]   ;;  %v4366_v22 = vld [vmem:[#allocation8 + $0x148] ss:$20 sps:$4 sm:$0xff]  }
 0x14f   :  { %v467_v25 = vpop.f32.mrf.mxu0 }
 0x150   :  { %2133 = vmatpush1.bf16.msra.mxu1 %v4291_v17  ;;  %2174 = vmatpush1.bf16.msra.mxu0 %v4294_v18  ;;  %v5068_v27 = vpack.c.bf16 %v474_v24, %v474_v24  ;;  %v4360_v17 = vld [vmem:[#allocation8 + $0x170] ss:$20 sps:$4 sm:$0xff]   ;;  %v463_v18 = vadd.f32 %v5066_v15, %v198_v12  ;;  %v4369_v25 = vld [vmem:[#allocation8 + $0x3a0] ss:$20 sps:$4 sm:$0xff]  }
 0x151   :  { %2134 = vmatprep.subr.bf16.mxu1 %v4299_v20  ;;  %2175 = vmatprep.subr.bf16.mxu0 %v4302_v21  ;;  %v4368_v20 = vld [vmem:[#allocation8 + $0x14c] ss:$20 sps:$4 sm:$0xff]   ;;  %v4374_v24 = vld [vmem:[#allocation8 + $0x624] ss:$20 sps:$4 sm:$0xff]   ;;  %v4431_v12 = vld [vmem:[#allocation8 + $0x494] ss:$20 sps:$4 sm:$0xff]  }
 0x152   :  { %2158 = vmatprep.mubr.bf16.mxu1 %v5068_v27  ;;  %v4363_v21 = vld [vmem:[#allocation8 + $0x640] ss:$20 sps:$4 sm:$0xff]  }
 0x153   :  { %v4372_v15 = vld [vmem:[#allocation8 + $0x620] ss:$20 sps:$4 sm:$0xff]  }
 0x154   :  { %2135 = vmatpush1.bf16.msra.mxu1 %v4297_v23  ;;  %2176 = vmatpush1.bf16.msra.mxu0 %v4300_v26  ;;  %v473_v23 = vmax.f32 %v463_v18, 0.0  ;;  %v4440_v18 = vld [vmem:[#allocation8 + $0x6ec] ss:$20 sps:$4 sm:$0xff]  }
 0x155   :  { %2136 = vmatprep.subr.bf16.mxu1 %v4305_v28  ;;  %2177 = vmatprep.subr.bf16.mxu0 %v4308_v29  ;;  %v4377_v28 = vld [vmem:[#allocation8 + $0x37c] ss:$20 sps:$4 sm:$0xff]  }
 0x156   :  { %v5076_v26 = vpack.c.bf16 %v473_v23, %v473_v23  ;;  %v4380_v29 = vld [vmem:[#allocation8 + $0x5fc] ss:$20 sps:$4 sm:$0xff]   ;;  %v4441_v23 = vld [vmem:[#allocation8 + $0x440] ss:$20 sps:$4 sm:$0xff]  }
 0x158   :  { %2137 = vmatpush1.bf16.msra.mxu1 %v4303_v30  ;;  %2178 = vmatpush1.bf16.msra.mxu0 %v4306_v31  ;;  %v4375_v30 = vld [vmem:[#allocation8 + $0x378] ss:$20 sps:$4 sm:$0xff]  }
 0x159   :  { %2138 = vmatprep.subr.bf16.mxu1 %v4311_v32  ;;  %2179 = vmatprep.subr.bf16.mxu0 %v4314_v33  ;;  %v4378_v31 = vld [vmem:[#allocation8 + $0x5f8] ss:$20 sps:$4 sm:$0xff]   ;;  %v4383_v32 = vld [vmem:[#allocation8 + $0x354] ss:$20 sps:$4 sm:$0xff]  }
 0x15a   :  { %v4386_v33 = vld [vmem:[#allocation8 + $0x5d4] ss:$20 sps:$4 sm:$0xff]  }
 0x15c   :  { %2139 = vmatpush1.bf16.msra.mxu1 %v4309_v40  ;;  %2180 = vmatpush1.bf16.msra.mxu0 %v4312_v41  ;;  %v4381_v40 = vld [vmem:[#allocation8 + $0x350] ss:$20 sps:$4 sm:$0xff]  }
 0x15d   :  { %2140 = vmatprep.subr.bf16.mxu1 %v4317_v42  ;;  %2181 = vmatprep.subr.bf16.mxu0 %v4320_v43  ;;  %v4384_v41 = vld [vmem:[#allocation8 + $0x5d0] ss:$20 sps:$4 sm:$0xff]   ;;  %v4389_v42 = vld [vmem:[#allocation8 + $0x32c] ss:$20 sps:$4 sm:$0xff]  }
 0x15e   :  { %v4392_v43 = vld [vmem:[#allocation8 + $0x5ac] ss:$20 sps:$4 sm:$0xff]  }
 0x160   :  { %2141 = vmatpush1.bf16.msra.mxu1 %v4315_v44  ;;  %2182 = vmatpush1.bf16.msra.mxu0 %v4318_v45  ;;  %v4387_v44 = vld [vmem:[#allocation8 + $0x328] ss:$20 sps:$4 sm:$0xff]  }
 0x161   :  { %2142 = vmatprep.subr.bf16.mxu1 %v4323_v46  ;;  %2183 = vmatprep.subr.bf16.mxu0 %v4326_v47  ;;  %v4390_v45 = vld [vmem:[#allocation8 + $0x5a8] ss:$20 sps:$4 sm:$0xff]   ;;  %v4395_v46 = vld [vmem:[#allocation8 + $0x304] ss:$20 sps:$4 sm:$0xff]  }
 0x162   :  { %v4398_v47 = vld [vmem:[#allocation8 + $0x584] ss:$20 sps:$4 sm:$0xff]  }
 0x164   :  { %2143 = vmatpush2.bf16.msra.mxu1 %v4321_v48  ;;  %2184 = vmatpush2.bf16.msra.mxu0 %v4324_v49  ;;  %v4393_v48 = vld [vmem:[#allocation8 + $0x300] ss:$20 sps:$4 sm:$0xff]  }
 0x165   :  { %2144 = vmatprep.subr.bf16.mxu1 %v4329_v50  ;;  %2185 = vmatprep.subr.bf16.mxu0 %v4332_v51  ;;  %v4396_v49 = vld [vmem:[#allocation8 + $0x580] ss:$20 sps:$4 sm:$0xff]   ;;  %v4401_v50 = vld [vmem:[#allocation8 + $0x2dc] ss:$20 sps:$4 sm:$0xff]  }
 0x166   :  { %v4404_v51 = vld [vmem:[#allocation8 + $0x55c] ss:$20 sps:$4 sm:$0xff]  }
 0x168   :  { %2145 = vmatpush2.bf16.msra.mxu1 %v4327_v52  ;;  %2186 = vmatpush2.bf16.msra.mxu0 %v4330_v53  ;;  %v4399_v52 = vld [vmem:[#allocation8 + $0x2d8] ss:$20 sps:$4 sm:$0xff]  }
 0x169   :  { %2146 = vmatprep.subr.bf16.mxu1 %v4335_v54  ;;  %2187 = vmatprep.subr.bf16.mxu0 %v4338_v55  ;;  %v4402_v53 = vld [vmem:[#allocation8 + $0x558] ss:$20 sps:$4 sm:$0xff]   ;;  %v4407_v54 = vld [vmem:[#allocation8 + $0x2b4] ss:$20 sps:$4 sm:$0xff]  }
 0x16a   :  { %v4410_v55 = vld [vmem:[#allocation8 + $0x534] ss:$20 sps:$4 sm:$0xff]  }
 0x16c   :  { %2147 = vmatpush2.bf16.msra.mxu1 %v4333_v56  ;;  %2188 = vmatpush2.bf16.msra.mxu0 %v4336_v57  ;;  %v4405_v56 = vld [vmem:[#allocation8 + $0x2b0] ss:$20 sps:$4 sm:$0xff]  }
 0x16d   :  { %2148 = vmatprep.subr.bf16.mxu1 %v4341_v58  ;;  %2189 = vmatprep.subr.bf16.mxu0 %v4344_v59  ;;  %v4408_v57 = vld [vmem:[#allocation8 + $0x530] ss:$20 sps:$4 sm:$0xff]   ;;  %v4413_v58 = vld [vmem:[#allocation8 + $0x28c] ss:$20 sps:$4 sm:$0xff]  }
 0x16e   :  { %v4416_v59 = vld [vmem:[#allocation8 + $0x50c] ss:$20 sps:$4 sm:$0xff]  }
 0x170   :  { %2149 = vmatpush2.bf16.msra.mxu1 %v4339_v61  ;;  %2190 = vmatpush2.bf16.msra.mxu0 %v4342_v62  ;;  %v4411_v61 = vld [vmem:[#allocation8 + $0x288] ss:$20 sps:$4 sm:$0xff]  }
 0x171   :  { %2150 = vmatprep.subr.bf16.mxu1 %v4347_v63  ;;  %2191 = vmatprep.subr.bf16.mxu0 %v4350_v4  ;;  %v4414_v62 = vld [vmem:[#allocation8 + $0x508] ss:$20 sps:$4 sm:$0xff]   ;;  %v4419_v63 = vld [vmem:[#allocation8 + $0x4e4] ss:$20 sps:$4 sm:$0xff]  }
 0x172   :  { %v4422_v4 = vld [vmem:[#allocation8 + $0x764] ss:$20 sps:$4 sm:$0xff]  }
 0x174   :  { %2151 = vmatpush2.bf16.msra.mxu1 %v4345_v5  ;;  %2192 = vmatpush2.bf16.msra.mxu0 %v4348_v6  ;;  %v4417_v5 = vld [vmem:[#allocation8 + $0x4e0] ss:$20 sps:$4 sm:$0xff]  }
 0x175   :  { %2152 = vmatprep.subr.bf16.mxu1 %v4353_v8  ;;  %2193 = vmatprep.subr.bf16.mxu0 %v4356_v9  ;;  %v4420_v6 = vld [vmem:[#allocation8 + $0x760] ss:$20 sps:$4 sm:$0xff]   ;;  %v4425_v8 = vld [vmem:[#allocation8 + $0x4bc] ss:$20 sps:$4 sm:$0xff]  }
 0x176   :  { %v4428_v9 = vld [vmem:[#allocation8 + $0x73c] ss:$20 sps:$4 sm:$0xff]  }
 0x178   :  { %2153 = vmatpush2.bf16.msra.mxu1 %v4351_v10  ;;  %2194 = vmatpush2.bf16.msra.mxu0 %v4354_v11  ;;  %v4423_v10 = vld [vmem:[#allocation8 + $0x4b8] ss:$20 sps:$4 sm:$0xff]  }
 0x179   :  { %2154 = vmatprep.subr.bf16.mxu1 %v4359_v13  ;;  %2195 = vmatprep.subr.bf16.mxu0 %v4362_v14  ;;  %v4426_v11 = vld [vmem:[#allocation8 + $0x738] ss:$20 sps:$4 sm:$0xff]   ;;  %v4434_v13 = vld [vmem:[#allocation8 + $0x714] ss:$20 sps:$4 sm:$0xff]   ;;  %v4429_v14 = vld [vmem:[#allocation8 + $0x490] ss:$20 sps:$4 sm:$0xff]  }
 0x17c   :  { %2155 = vmatpush2.bf16.msra.mxu1 %v4357_v16  ;;  %2196 = vmatpush2.bf16.msra.mxu0 %v4360_v17  ;;  %v4432_v16 = vld [vmem:[#allocation8 + $0x710] ss:$20 sps:$4 sm:$0xff]   ;;  %v4437_v17 = vld [vmem:[#allocation8 + $0x46c] ss:$20 sps:$4 sm:$0xff]  }
 0x17d   :  { %2156 = vmatprep.subr.bf16.mxu1 %v4365_v19  ;;  %2197 = vmatprep.subr.bf16.mxu0 %v4368_v20  ;;  %v4435_v19 = vld [vmem:[#allocation8 + $0x468] ss:$20 sps:$4 sm:$0xff]  }
 0x17e   :  { %v4438_v20 = vld [vmem:[#allocation8 + $0x6e8] ss:$20 sps:$4 sm:$0xff]  }
 0x180   :  { %2157 = vmatpush2.bf16.msra.mxu1 %v4363_v21  ;;  %2198 = vmatpush2.bf16.msra.mxu0 %v4366_v22  ;;  %v4443_v21 = vld [vmem:[#allocation8 + $0x444] ss:$20 sps:$4 sm:$0xff]  }
 0x181   :  { %2208 = vmatprep.subr.bf16.mxu1 %v4371_v35  ;;  %2249 = vmatprep.subr.bf16.mxu0 %v4374_v24  ;;  %v4446_v22 = vld [vmem:[#allocation8 + $0x6c4] ss:$20 sps:$4 sm:$0xff]   ;;  %v4444_v35 = vld [vmem:[#allocation8 + $0x6c0] ss:$20 sps:$4 sm:$0xff]   ;;  %v4449_v24 = vld [vmem:[#allocation8 + $0x41c] ss:$20 sps:$4 sm:$0xff]  }
 0x183   :  { %2159 = vmatmul.mubr.bf16.vlgmr.msra.gmra.mxu1 %v5076_v26  ;;  %2200 = vmatmul.mubr.bf16.vlgmr.msra.gmra.mxu0 %v5057_v3 }
 0x184   :  { %2209 = vmatpush1.bf16.msra.mxu1 %v4369_v25  ;;  %2240 = vmatprep.mubr.bf16.mxu1 %v5055_v2  ;;  %v4452_v25 = vld [vmem:[#allocation8 + $0x69c] ss:$20 sps:$4 sm:$0xff]  }
 0x185   :  { %2250 = vmatpush1.bf16.msra.mxu0 %v4372_v15  ;;  %2281 = vmatprep.mubr.bf16.mxu0 %v5068_v27  ;;  %v4447_v15 = vld [vmem:[#allocation8 + $0x418] ss:$20 sps:$4 sm:$0xff]  }
 0x186   :  { %2210 = vmatprep.subr.bf16.mxu1 %v4377_v28  ;;  %2251 = vmatprep.subr.bf16.mxu0 %v4380_v29  ;;  %v4450_v28 = vld [vmem:[#allocation8 + $0x698] ss:$20 sps:$4 sm:$0xff]   ;;  %v4455_v29 = vld [vmem:[#allocation8 + $0x3f4] ss:$20 sps:$4 sm:$0xff]  }
 0x188   :  { %2211 = vmatpush1.bf16.msra.mxu1 %v4375_v30  ;;  %v4458_v30 = vld [vmem:[#allocation8 + $0x674] ss:$20 sps:$4 sm:$0xff]  }
 0x189   :  { %2252 = vmatpush1.bf16.msra.mxu0 %v4378_v31  ;;  %2212 = vmatprep.subr.bf16.mxu1 %v4383_v32  ;;  %v4453_v31 = vld [vmem:[#allocation8 + $0x3f0] ss:$20 sps:$4 sm:$0xff]  }
 0x18a   :  { %2253 = vmatprep.subr.bf16.mxu0 %v4386_v33  ;;  %v4456_v32 = vld [vmem:[#allocation8 + $0x670] ss:$20 sps:$4 sm:$0xff]   ;;  %v4461_v33 = vld [vmem:[#allocation8 + $0x3cc] ss:$20 sps:$4 sm:$0xff]  }
 0x18c   :  { %2213 = vmatpush1.bf16.msra.mxu1 %v4381_v40  ;;  %v4464_v40 = vld [vmem:[#allocation8 + $0x64c] ss:$20 sps:$4 sm:$0xff]  }
 0x18d   :  { %2254 = vmatpush1.bf16.msra.mxu0 %v4384_v41  ;;  %2214 = vmatprep.subr.bf16.mxu1 %v4389_v42  ;;  %v4459_v41 = vld [vmem:[#allocation8 + $0x3c8] ss:$20 sps:$4 sm:$0xff]  }
 0x18e   :  { %2255 = vmatprep.subr.bf16.mxu0 %v4392_v43  ;;  %v4462_v42 = vld [vmem:[#allocation8 + $0x648] ss:$20 sps:$4 sm:$0xff]  }
 0x18f   :  { %v4465_v43 = vld [vmem:[#allocation8 + $0x268] ss:$20 sps:$4 sm:$0xff]  }
 0x190   :  { %2215 = vmatpush1.bf16.msra.mxu1 %v4387_v44  ;;  %v4466_v44 = vld [vmem:[#allocation8 + $0x4e8] ss:$20 sps:$4 sm:$0xff]  }
 0x191   :  { %2256 = vmatpush1.bf16.msra.mxu0 %v4390_v45  ;;  %2216 = vmatprep.subr.bf16.mxu1 %v4395_v46  ;;  %v4467_v45 = vld [vmem:[#allocation8 + $0x128] ss:$20 sps:$4 sm:$0xff]  }
 0x192   :  { %2257 = vmatprep.subr.bf16.mxu0 %v4398_v47  ;;  %v4468_v46 = vld [vmem:[#allocation8 + $0x3a8] ss:$20 sps:$4 sm:$0xff]   ;;  %v4469_v47 = vld [vmem:[#allocation8 + $0x240] ss:$20 sps:$4 sm:$0xff]  }
 0x194   :  { %2217 = vmatpush1.bf16.msra.mxu1 %v4393_v48  ;;  %v4470_v48 = vld [vmem:[#allocation8 + $0x4c0] ss:$20 sps:$4 sm:$0xff]  }
 0x195   :  { %2258 = vmatpush1.bf16.msra.mxu0 %v4396_v49  ;;  %2218 = vmatprep.subr.bf16.mxu1 %v4401_v50  ;;  %v4471_v49 = vld [vmem:[#allocation8 + $0x100] ss:$20 sps:$4 sm:$0xff]  }
 0x196   :  { %2259 = vmatprep.subr.bf16.mxu0 %v4404_v51  ;;  %v4472_v50 = vld [vmem:[#allocation8 + $0x380] ss:$20 sps:$4 sm:$0xff]   ;;  %v4473_v51 = vld [vmem:[#allocation8 + $0x218] ss:$20 sps:$4 sm:$0xff]  }
 0x198   :  { %2219 = vmatpush1.bf16.msra.mxu1 %v4399_v52  ;;  %v4474_v52 = vld [vmem:[#allocation8 + $0x498] ss:$20 sps:$4 sm:$0xff]  }
 0x199   :  { %2260 = vmatpush1.bf16.msra.mxu0 %v4402_v53  ;;  %2220 = vmatprep.subr.bf16.mxu1 %v4407_v54  ;;  %v4475_v53 = vld [vmem:[#allocation8 + $0xd8] ss:$20 sps:$4 sm:$0xff]  }
 0x19a   :  { %2261 = vmatprep.subr.bf16.mxu0 %v4410_v55  ;;  %v4476_v54 = vld [vmem:[#allocation8 + $0x358] ss:$20 sps:$4 sm:$0xff]   ;;  %v4477_v55 = vld [vmem:[#allocation8 + $0x1f0] ss:$20 sps:$4 sm:$0xff]  }
 0x19c   :  { %2221 = vmatpush1.bf16.msra.mxu1 %v4405_v56  ;;  %v4478_v56 = vld [vmem:[#allocation8 + $0x470] ss:$20 sps:$4 sm:$0xff]  }
 0x19d   :  { %2262 = vmatpush1.bf16.msra.mxu0 %v4408_v57  ;;  %2222 = vmatprep.subr.bf16.mxu1 %v4413_v58  ;;  %v4479_v57 = vld [vmem:[#allocation8 + $0xb0] ss:$20 sps:$4 sm:$0xff]   ;;  %v4481_v58 = vld [vmem:[#allocation8 + $0x1c8] ss:$20 sps:$4 sm:$0xff]  }
 0x19e   :  { %2263 = vmatprep.subr.bf16.mxu0 %v4416_v59  ;;  %v4482_v59 = vld [vmem:[#allocation8 + $0x448] ss:$20 sps:$4 sm:$0xff]  }
 0x1a0   :  { %2223 = vmatpush1.bf16.msra.mxu1 %v4411_v61  ;;  %v4484_v61 = vld [vmem:[#allocation8 + $0x308] ss:$20 sps:$4 sm:$0xff]  }
 0x1a1   :  { %2264 = vmatpush1.bf16.msra.mxu0 %v4414_v62  ;;  %2224 = vmatprep.subr.bf16.mxu1 %v4419_v63  ;;  %v4485_v62 = vld [vmem:[#allocation8 + $0x1a0] ss:$20 sps:$4 sm:$0xff]  }
 0x1a2   :  { %2265 = vmatprep.subr.bf16.mxu0 %v4422_v4  ;;  %v4486_v63 = vld [vmem:[#allocation8 + $0x420] ss:$20 sps:$4 sm:$0xff]  }
 0x1a3   :  { %v4487_v4 = vld [vmem:[#allocation8 + $0x60] ss:$20 sps:$4 sm:$0xff]  }
 0x1a4   :  { %2225 = vmatpush2.bf16.msra.mxu1 %v4417_v5  ;;  %v4488_v5 = vld [vmem:[#allocation8 + $0x2e0] ss:$20 sps:$4 sm:$0xff]  }
 0x1a5   :  { %2266 = vmatpush2.bf16.msra.mxu0 %v4420_v6  ;;  %2226 = vmatprep.subr.bf16.mxu1 %v4425_v8  ;;  %v4489_v6 = vld [vmem:[#allocation8 + $0x178] ss:$20 sps:$4 sm:$0xff]  }
 0x1a6   :  { %2267 = vmatprep.subr.bf16.mxu0 %v4428_v9  ;;  %v4490_v8 = vld [vmem:[#allocation8 + $0x3f8] ss:$20 sps:$4 sm:$0xff]  }
 0x1a7   :  { %v4491_v9 = vld [vmem:[#allocation8 + $0x38] ss:$20 sps:$4 sm:$0xff]  }
 0x1a8   :  { %2227 = vmatpush2.bf16.msra.mxu1 %v4423_v10  ;;  %v4492_v10 = vld [vmem:[#allocation8 + $0x2b8] ss:$20 sps:$4 sm:$0xff]  }
 0x1a9   :  { %2268 = vmatpush2.bf16.msra.mxu0 %v4426_v11  ;;  %2228 = vmatprep.subr.bf16.mxu1 %v4431_v12  ;;  %v4493_v11 = vld [vmem:[#allocation8 + $0x150] ss:$20 sps:$4 sm:$0xff]  }
 0x1aa   :  { %2269 = vmatprep.subr.bf16.mxu0 %v4434_v13  ;;  %v4494_v12 = vld [vmem:[#allocation8 + $0x3d0] ss:$20 sps:$4 sm:$0xff]  }
 0x1ab   :  { %v4495_v13 = vld [vmem:[#allocation8 + $0x10] ss:$20 sps:$4 sm:$0xff]  }
 0x1ac   :  { %2229 = vmatpush2.bf16.msra.mxu1 %v4429_v14  ;;  %v4496_v14 = vld [vmem:[#allocation8 + $0x290] ss:$20 sps:$4 sm:$0xff]  }
 0x1ad   :  { %2270 = vmatpush2.bf16.msra.mxu0 %v4432_v16  ;;  %2230 = vmatprep.subr.bf16.mxu1 %v4437_v17  ;;  %v4497_v16 = vld [vmem:[#allocation8 + $0x768] ss:$20 sps:$4 sm:$0xff]  }
 0x1ae   :  { %2271 = vmatprep.subr.bf16.mxu0 %v4440_v18  ;;  %v4515_v17 = vld [vmem:[#allocation10 + $0x74] ss:$8 sps:$4 sm:$0xff]  }
 0x1af   :  { %v4498_v18 = vld [vmem:[#allocation8 + $0x628] ss:$20 sps:$4 sm:$0xff]  }
 0x1b0   :  { %2231 = vmatpush2.bf16.msra.mxu1 %v4435_v19  ;;  %v4499_v19 = vld [vmem:[#allocation8 + $0x740] ss:$20 sps:$4 sm:$0xff]  }
 0x1b1   :  { %2272 = vmatpush2.bf16.msra.mxu0 %v4438_v20  ;;  %2232 = vmatprep.subr.bf16.mxu1 %v4443_v21  ;;  %v4513_v20 = vld [vmem:[#allocation10 + $0x70] ss:$8 sps:$4 sm:$0xff]   ;;  %v4518_v21 = vld [vmem:[#allocation10 + $0x64] ss:$8 sps:$4 sm:$0xff]  }
 0x1b2   :  { %2273 = vmatprep.subr.bf16.mxu0 %v4446_v22  ;;  %v4500_v22 = vld [vmem:[#allocation8 + $0x600] ss:$20 sps:$4 sm:$0xff]  }
 0x1b4   :  { %2233 = vmatpush2.bf16.msra.mxu1 %v4441_v23  ;;  %v4501_v23 = vld [vmem:[#allocation8 + $0x718] ss:$20 sps:$4 sm:$0xff]  }
 0x1b5   :  { %2274 = vmatpush2.bf16.msra.mxu0 %v4444_v35  ;;  %2234 = vmatprep.subr.bf16.mxu1 %v4449_v24  ;;  %v4516_v35 = vld [vmem:[#allocation10 + $0x60] ss:$8 sps:$4 sm:$0xff]   ;;  %v4521_v24 = vld [vmem:[#allocation10 + $0x54] ss:$8 sps:$4 sm:$0xff]  }
 0x1b6   :  { %2275 = vmatprep.subr.bf16.mxu0 %v4452_v25  ;;  %v4502_v25 = vld [vmem:[#allocation8 + $0x5d8] ss:$20 sps:$4 sm:$0xff]  }
 0x1b8   :  { %2235 = vmatpush2.bf16.msra.mxu1 %v4447_v15  ;;  %v4503_v15 = vld [vmem:[#allocation8 + $0x6f0] ss:$20 sps:$4 sm:$0xff]  }
 0x1b9   :  { %2276 = vmatpush2.bf16.msra.mxu0 %v4450_v28  ;;  %2236 = vmatprep.subr.bf16.mxu1 %v4455_v29  ;;  %v4519_v28 = vld [vmem:[#allocation10 + $0x50] ss:$8 sps:$4 sm:$0xff]   ;;  %v4505_v29 = vld [vmem:[#allocation8 + $0x6c8] ss:$20 sps:$4 sm:$0xff]  }
 0x1ba   :  { %2277 = vmatprep.subr.bf16.mxu0 %v4458_v30  ;;  %v4527_v30 = vld [vmem:[#allocation10 + $0x34] ss:$8 sps:$4 sm:$0xff]  }
 0x1bc   :  { %2237 = vmatpush2.bf16.msra.mxu1 %v4453_v31  ;;  %v4506_v31 = vld [vmem:[#allocation8 + $0x588] ss:$20 sps:$4 sm:$0xff]  }
 0x1bd   :  { %2278 = vmatpush2.bf16.msra.mxu0 %v4456_v32  ;;  %2238 = vmatprep.subr.bf16.mxu1 %v4461_v33  ;;  %v4507_v32 = vld [vmem:[#allocation8 + $0x6a0] ss:$20 sps:$4 sm:$0xff]   ;;  %v4525_v33 = vld [vmem:[#allocation10 + $0x30] ss:$8 sps:$4 sm:$0xff]  }
 0x1be   :  { %2279 = vmatprep.subr.bf16.mxu0 %v4464_v40  ;;  %v4530_v40 = vld [vmem:[#allocation10 + $0x24] ss:$8 sps:$4 sm:$0xff]  }
 0x1c0   :  { %2239 = vmatpush2.bf16.msra.mxu1 %v4459_v41  ;;  %v4508_v41 = vld [vmem:[#allocation8 + $0x560] ss:$20 sps:$4 sm:$0xff]  }
 0x1c1   :  { %2280 = vmatpush2.bf16.msra.mxu0 %v4462_v42  ;;  %4004 = vmatprep.subr.bf16.mxu1 %v4465_v43  ;;  %v4509_v42 = vld [vmem:[#allocation8 + $0x678] ss:$20 sps:$4 sm:$0xff]   ;;  %v4528_v43 = vld [vmem:[#allocation10 + $0x20] ss:$8 sps:$4 sm:$0xff]  }
 0x1c2   :  { %4026 = vmatprep.subr.bf16.mxu0 %v4466_v44  ;;  %v4533_v44 = vld [vmem:[#allocation10 + $0x14] ss:$8 sps:$4 sm:$0xff]  }
 0x1c3   :  { %2241 = vmatmul.mubr.bf16.vlgmr.msra.gmra.mxu1 %v5051_v60 }
 0x1c4   :  { %2282 = vmatmul.mubr.bf16.vlgmr.msra.gmra.mxu0 %v5076_v26  ;;  %4005 = vmatpush3.bf16.msra.mxu1 %v4467_v45  ;;  %v4510_v45 = vld [vmem:[#allocation8 + $0x538] ss:$20 sps:$4 sm:$0xff]  }
 0x1c5   :  { %2322 = vmatprep.mubr.bf16.mxu1 %v5053_v1  ;;  %4027 = vmatpush3.bf16.msra.mxu0 %v4468_v46  ;;  %v4480_v1 = vld [vmem:[#allocation8 + $0x330] ss:$20 sps:$4 sm:$0xff]  }
 0x1c6   :  { %2362 = vmatprep.mubr.bf16.mxu0 %v5055_v2  ;;  %4006 = vmatprep.subr.bf16.mxu1 %v4469_v47  ;;  %v4483_v2 = vld [vmem:[#allocation8 + $0x88] ss:$20 sps:$4 sm:$0xff]   ;;  %v4511_v46 = vld [vmem:[#allocation8 + $0x650] ss:$20 sps:$4 sm:$0xff]  }
 0x1c7   :  { %4028 = vmatprep.subr.bf16.mxu0 %v4470_v48  ;;  %v4531_v47 = vld [vmem:[#allocation10 + $0x10] ss:$8 sps:$4 sm:$0xff]   ;;  %v4536_v48 = vld [vmem:[#allocation10 + $0x4] ss:$8 sps:$4 sm:$0xff]  }
 0x1c8   :  { %4007 = vmatpush3.bf16.msra.mxu1 %v4471_v49  ;;  %v4512_v49 = vld [vmem:[#allocation8 + $0x510] ss:$20 sps:$4 sm:$0xff]  }
 0x1c9   :  { %4029 = vmatpush3.bf16.msra.mxu0 %v4472_v50  ;;  %4008 = vmatprep.subr.bf16.mxu1 %v4473_v51  ;;  %v4563_v50 = vld [vmem:[#allocation10 + $0x174] ss:$8 sps:$4 sm:$0xff]   ;;  %v4534_v51 = vld [vmem:[#allocation10] ss:$8 sps:$4 sm:$0xff]  }
 0x1ca   :  { %4030 = vmatprep.subr.bf16.mxu0 %v4474_v52  ;;  %v4539_v52 = vld [vmem:[#allocation10 + $0xf4] ss:$8 sps:$4 sm:$0xff]  }
 0x1cc   :  { %4009 = vmatpush3.bf16.msra.mxu1 %v4475_v53  ;;  %v4561_v53 = vld [vmem:[#allocation10 + $0x170] ss:$8 sps:$4 sm:$0xff]  }
 0x1cd   :  { %4031 = vmatpush3.bf16.msra.mxu0 %v4476_v54  ;;  %4010 = vmatprep.subr.bf16.mxu1 %v4477_v55  ;;  %v4566_v54 = vld [vmem:[#allocation10 + $0x164] ss:$8 sps:$4 sm:$0xff]   ;;  %v4537_v55 = vld [vmem:[#allocation10 + $0xf0] ss:$8 sps:$4 sm:$0xff]  }
 0x1ce   :  { %4032 = vmatprep.subr.bf16.mxu0 %v4478_v56 }
 0x1d0   :  { %4011 = vmatpush3.bf16.msra.mxu1 %v4479_v57 }
 0x1d1   :  { %4033 = vmatpush3.bf16.msra.mxu0 %v4480_v1  ;;  %4012 = vmatprep.subr.bf16.mxu1 %v4481_v58  ;;  %v4542_v1 = vld [vmem:[#allocation10 + $0xe4] ss:$8 sps:$4 sm:$0xff]   ;;  %v4564_v58 = vld [vmem:[#allocation10 + $0x160] ss:$8 sps:$4 sm:$0xff]  }
 0x1d2   :  { %4034 = vmatprep.subr.bf16.mxu0 %v4482_v59 }
 0x1d4   :  { %4013 = vmatpush3.bf16.msra.mxu1 %v4483_v2 }
 0x1d5   :  { %4035 = vmatpush3.bf16.msra.mxu0 %v4484_v61  ;;  %4014 = vmatprep.subr.bf16.mxu1 %v4485_v62  ;;  %v4569_v61 = vld [vmem:[#allocation10 + $0x154] ss:$8 sps:$4 sm:$0xff]   ;;  %v4540_v62 = vld [vmem:[#allocation10 + $0xe0] ss:$8 sps:$4 sm:$0xff]  }
 0x1d6   :  { %4036 = vmatprep.subr.bf16.mxu0 %v4486_v63 }
 0x1d8   :  { %4015 = vmatpush3.bf16.msra.mxu1 %v4487_v4 }
 0x1d9   :  { %4037 = vmatpush3.bf16.msra.mxu0 %v4488_v5  ;;  %4016 = vmatprep.subr.bf16.mxu1 %v4489_v6  ;;  %v4567_v5 = vld [vmem:[#allocation10 + $0x150] ss:$8 sps:$4 sm:$0xff]  }
 0x1da   :  { %4038 = vmatprep.subr.bf16.mxu0 %v4490_v8 }
 0x1dc   :  { %4017 = vmatpush3.bf16.msra.mxu1 %v4491_v9  ;;  %v4572_v9 = vld [vmem:[#allocation10 + $0x144] ss:$8 sps:$4 sm:$0xff]  }
 0x1dd   :  { %4039 = vmatpush3.bf16.msra.mxu0 %v4492_v10  ;;  %4018 = vmatprep.subr.bf16.mxu1 %v4493_v11  ;;  %v4543_v10 = vld [vmem:[#allocation10 + $0xd0] ss:$8 sps:$4 sm:$0xff]   ;;  %v4548_v11 = vld [vmem:[#allocation10 + $0xc4] ss:$8 sps:$4 sm:$0xff]  }
 0x1de   :  { %4040 = vmatprep.subr.bf16.mxu0 %v4494_v12  ;;  %v4570_v12 = vld [vmem:[#allocation10 + $0x140] ss:$8 sps:$4 sm:$0xff]  }
 0x1e0   :  { %4019 = vmatpush3.bf16.msra.mxu1 %v4495_v13  ;;  %v4575_v13 = vld [vmem:[#allocation10 + $0x134] ss:$8 sps:$4 sm:$0xff]  }
 0x1e1   :  { %4041 = vmatpush3.bf16.msra.mxu0 %v4496_v14  ;;  %4048 = vmatprep.subr.bf16.mxu1 %v4497_v16  ;;  %v4546_v14 = vld [vmem:[#allocation10 + $0xc0] ss:$8 sps:$4 sm:$0xff]   ;;  %v4551_v16 = vld [vmem:[#allocation10 + $0xb4] ss:$8 sps:$4 sm:$0xff]  }
 0x1e2   :  { %2912 = vmatprep.subr.bf16.mxu0 %v4515_v17  ;;  %v4573_v17 = vld [vmem:[#allocation10 + $0x130] ss:$8 sps:$4 sm:$0xff]  }
 0x1e3   :  { %2323 = vmatmul.mubr.bf16.vlgmr.msra.gmra.mxu1 %v5057_v3  ;;  %v4524_v3 = vld [vmem:[#allocation10 + $0x44] ss:$8 sps:$4 sm:$0xff]  }
 0x1e4   :  { %2363 = vmatmul.mubr.bf16.vlgmr.msra.gmra.mxu0 %v5051_v60  ;;  %4049 = vmatpush3.bf16.msra.mxu1 %v4498_v18  ;;  %v4504_v60 = vld [vmem:[#allocation8 + $0x5b0] ss:$20 sps:$4 sm:$0xff]  }
 0x1e5   :  { %2402 = vmatprep.mubr.bf16.mxu1 %v5068_v27  ;;  %4050 = vmatprep.subr.bf16.mxu1 %v4499_v19  ;;  %v4522_v27 = vld [vmem:[#allocation10 + $0x40] ss:$8 sps:$4 sm:$0xff]   ;;  %v4578_v18 = vld [vmem:[#allocation10 + $0x124] ss:$8 sps:$4 sm:$0xff]   ;;  %v4549_v19 = vld [vmem:[#allocation10 + $0xb0] ss:$8 sps:$4 sm:$0xff]  }
 0x1e6   :  { %2913 = vmatpush1.bf16.msra.mxu0 %v4513_v20  ;;  %v4554_v20 = vld [vmem:[#allocation10 + $0xa4] ss:$8 sps:$4 sm:$0xff]  }
 0x1e7   :  { %2914 = vmatprep.subr.bf16.mxu0 %v4518_v21  ;;  %v4576_v21 = vld [vmem:[#allocation10 + $0x120] ss:$8 sps:$4 sm:$0xff]  }
 0x1e8   :  { %4051 = vmatpush3.bf16.msra.mxu1 %v4500_v22  ;;  %v4581_v22 = vld [vmem:[#allocation10 + $0x114] ss:$8 sps:$4 sm:$0xff]  }
 0x1e9   :  { %4052 = vmatprep.subr.bf16.mxu1 %v4501_v23  ;;  %v4552_v23 = vld [vmem:[#allocation10 + $0xa0] ss:$8 sps:$4 sm:$0xff]  }
 0x1ea   :  { %2915 = vmatpush1.bf16.msra.mxu0 %v4516_v35  ;;  %v4557_v35 = vld [vmem:[#allocation10 + $0x94] ss:$8 sps:$4 sm:$0xff]  }
 0x1eb   :  { %2916 = vmatprep.subr.bf16.mxu0 %v4521_v24  ;;  %v4579_v24 = vld [vmem:[#allocation10 + $0x110] ss:$8 sps:$4 sm:$0xff]  }
 0x1ec   :  { %4053 = vmatpush3.bf16.msra.mxu1 %v4502_v25  ;;  %v4584_v25 = vld [vmem:[#allocation10 + $0x104] ss:$8 sps:$4 sm:$0xff]  }
 0x1ed   :  { %4054 = vmatprep.subr.bf16.mxu1 %v4503_v15  ;;  %v4555_v15 = vld [vmem:[#allocation10 + $0x90] ss:$8 sps:$4 sm:$0xff]  }
 0x1ee   :  { %2917 = vmatpush1.bf16.msra.mxu0 %v4519_v28  ;;  %v4560_v28 = vld [vmem:[#allocation10 + $0x84] ss:$8 sps:$4 sm:$0xff]  }
 0x1ef   :  { %2918 = vmatprep.subr.bf16.mxu0 %v4524_v3  ;;  %v4582_v3 = vld [vmem:[#allocation10 + $0x100] ss:$8 sps:$4 sm:$0xff]  }
 0x1f0   :  { %4055 = vmatpush3.bf16.msra.mxu1 %v4504_v60  ;;  %v4587_v60 = vld [vmem:[#allocation10 + $0x1f4] ss:$8 sps:$4 sm:$0xff]  }
 0x1f1   :  { %4056 = vmatprep.subr.bf16.mxu1 %v4505_v29  ;;  %v4558_v29 = vld [vmem:[#allocation10 + $0x80] ss:$8 sps:$4 sm:$0xff]  }
 0x1f2   :  { %2919 = vmatpush1.bf16.msra.mxu0 %v4522_v27  ;;  %v4585_v27 = vld [vmem:[#allocation10 + $0x1f0] ss:$8 sps:$4 sm:$0xff]  }
 0x1f3   :  { %2920 = vmatprep.subr.bf16.mxu0 %v4527_v30  ;;  %v4590_v30 = vld [vmem:[#allocation10 + $0x1e4] ss:$8 sps:$4 sm:$0xff]  }
 0x1f4   :  { %4057 = vmatpush3.bf16.msra.mxu1 %v4506_v31  ;;  %v4588_v31 = vld [vmem:[#allocation10 + $0x1e0] ss:$8 sps:$4 sm:$0xff]  }
 0x1f5   :  { %4058 = vmatprep.subr.bf16.mxu1 %v4507_v32  ;;  %v4593_v32 = vld [vmem:[#allocation10 + $0x1d4] ss:$8 sps:$4 sm:$0xff]  }
 0x1f6   :  { %2921 = vmatpush1.bf16.msra.mxu0 %v4525_v33  ;;  %v4591_v33 = vld [vmem:[#allocation10 + $0x1d0] ss:$8 sps:$4 sm:$0xff]  }
 0x1f7   :  { %2922 = vmatprep.subr.bf16.mxu0 %v4530_v40  ;;  %v4596_v40 = vld [vmem:[#allocation10 + $0x1c4] ss:$8 sps:$4 sm:$0xff]  }
 0x1f8   :  { %4059 = vmatpush3.bf16.msra.mxu1 %v4508_v41  ;;  %v4611_v41 = vld [vmem:[#allocation10 + $0x274] ss:$8 sps:$4 sm:$0xff]  }
 0x1f9   :  { %4060 = vmatprep.subr.bf16.mxu1 %v4509_v42  ;;  %v4594_v42 = vld [vmem:[#allocation10 + $0x1c0] ss:$8 sps:$4 sm:$0xff]  }
 0x1fa   :  { %2923 = vmatpush1.bf16.msra.mxu0 %v4528_v43  ;;  %v4599_v43 = vld [vmem:[#allocation10 + $0x1b4] ss:$8 sps:$4 sm:$0xff]  }
 0x1fb   :  { %2924 = vmatprep.subr.bf16.mxu0 %v4533_v44  ;;  %v4597_v44 = vld [vmem:[#allocation10 + $0x1b0] ss:$8 sps:$4 sm:$0xff]  }
 0x1fc   :  { %4061 = vmatpush3.bf16.msra.mxu1 %v4510_v45  ;;  %v4602_v45 = vld [vmem:[#allocation10 + $0x1a4] ss:$8 sps:$4 sm:$0xff]  }
 0x1fd   :  { %4062 = vmatprep.subr.bf16.mxu1 %v4511_v46  ;;  %v4600_v46 = vld [vmem:[#allocation10 + $0x1a0] ss:$8 sps:$4 sm:$0xff]  }
 0x1fe   :  { %2925 = vmatpush1.bf16.msra.mxu0 %v4531_v47  ;;  %v4605_v47 = vld [vmem:[#allocation10 + $0x194] ss:$8 sps:$4 sm:$0xff]  }
 0x1ff   :  { %2926 = vmatprep.subr.bf16.mxu0 %v4536_v48  ;;  %v5101_v48 = vld [vmem:[%s5144_s4] sm:$0x1f] }
 0x200   :  { %4063 = vmatpush3.bf16.msra.mxu1 %v4512_v49  ;;  %v4603_v49 = vld [vmem:[#allocation10 + $0x190] ss:$8 sps:$4 sm:$0xff]  }
 0x201   :  { %2953 = vmatprep.subr.bf16.mxu1 %v4563_v50  ;;  %v4608_v50 = vld [vmem:[#allocation10 + $0x184] ss:$8 sps:$4 sm:$0xff]  }
 0x202   :  { %2927 = vmatpush1.bf16.msra.mxu0 %v4534_v51  ;;  %v774_v51 = vrot.slane %v5101_v48, %v5034_v36 }
 0x203   :  { %2403 = vmatmul.mubr.bf16.vlgmr.msra.gmra.mxu1 %v5076_v26  ;;  %v5090_v56 = vpop.f32.mrf.mxu1  ;;  %v5092_v57 = vpop.f32.mrf.mxu0  ;;  %2928 = vmatprep.subr.bf16.mxu0 %v4539_v52  ;;  %v4545_v26 = vld [vmem:[#allocation10 + $0xd4] ss:$8 sps:$4 sm:$0xff]   ;;  %v778_v52 = vrot.slane %v5101_v48, %v5038_v38 }
 0x204   :  { %2954 = vmatpush1.bf16.msra.mxu1 %v4561_v53  ;;  %v4606_v53 = vld [vmem:[#allocation10 + $0x180] ss:$8 sps:$4 sm:$0xff]  }
 0x205   :  { %v5094_v59 = vpop.f32.mrf.mxu1  ;;  %v5096_v2 = vpop.f32.mrf.mxu0  ;;  %2955 = vmatprep.subr.bf16.mxu1 %v4566_v54  ;;  %v2079_v54 = vadd.f32 %v5090_v56, %v774_v51 }
 0x206   :  { %2929 = vmatpush2.bf16.msra.mxu0 %v4537_v55  ;;  %v2081_v55 = vadd.f32 %v5094_v59, %v778_v52 }
 0x207   :  { %v2082_v63 = vpop.f32.mrf.mxu1  ;;  %v2123_v4 = vpop.f32.mrf.mxu0  ;;  %2930 = vmatprep.subr.bf16.mxu0 %v4542_v1  ;;  %v2120_v1 = vadd.f32 %v5092_v57, %v2079_v54  ;;  %v4612_v57 = vld [vmem:[#allocation10 + $0x260] ss:$8 sps:$4 sm:$0xff]  }
 0x208   :  { %2956 = vmatpush1.bf16.msra.mxu1 %v4564_v58 }
 0x209   :  { %v2083_v6 = vpop.f32.mrf.mxu1  ;;  %v2124_v8 = vpop.f32.mrf.mxu0  ;;  %2957 = vmatprep.subr.bf16.mxu1 %v4569_v61 }
 0x20a   :  { %2931 = vmatpush2.bf16.msra.mxu0 %v4540_v62  ;;  %v2122_v62 = vadd.f32 %v5096_v2, %v2081_v55  ;;  %v4617_v2 = vld [vmem:[#allocation10 + $0x254] ss:$8 sps:$4 sm:$0xff]  }
 0x20b   :  { %2932 = vmatprep.subr.bf16.mxu0 %v4545_v26 }
 0x20c   :  { %2958 = vmatpush1.bf16.msra.mxu1 %v4567_v5 }
 0x20d   :  { %2959 = vmatprep.subr.bf16.mxu1 %v4572_v9 }
 0x20e   :  { %2933 = vmatpush2.bf16.msra.mxu0 %v4543_v10 }
 0x20f   :  { %2934 = vmatprep.subr.bf16.mxu0 %v4548_v11 }
 0x210   :  { %2960 = vmatpush1.bf16.msra.mxu1 %v4570_v12 }
 0x211   :  { %2961 = vmatprep.subr.bf16.mxu1 %v4575_v13  ;;  %v4609_v13 = vld [vmem:[#allocation10 + $0x270] ss:$8 sps:$4 sm:$0xff]  }
 0x212   :  { %2935 = vmatpush2.bf16.msra.mxu0 %v4546_v14  ;;  %v4614_v14 = vld [vmem:[#allocation10 + $0x264] ss:$8 sps:$4 sm:$0xff]  }
 0x213   :  { %2936 = vmatprep.subr.bf16.mxu0 %v4551_v16  ;;  %v4615_v16 = vld [vmem:[#allocation10 + $0x250] ss:$8 sps:$4 sm:$0xff]  }
 0x214   :  { %2962 = vmatpush1.bf16.msra.mxu1 %v4573_v17  ;;  %v4620_v17 = vld [vmem:[#allocation10 + $0x244] ss:$8 sps:$4 sm:$0xff]  }
 0x215   :  { %2963 = vmatprep.subr.bf16.mxu1 %v4578_v18  ;;  %v4618_v18 = vld [vmem:[#allocation10 + $0x240] ss:$8 sps:$4 sm:$0xff]  }
 0x216   :  { %2937 = vmatpush2.bf16.msra.mxu0 %v4549_v19  ;;  %v4623_v19 = vld [vmem:[#allocation10 + $0x234] ss:$8 sps:$4 sm:$0xff]  }
 0x217   :  { %2938 = vmatprep.subr.bf16.mxu0 %v4554_v20  ;;  %v4621_v20 = vld [vmem:[#allocation10 + $0x230] ss:$8 sps:$4 sm:$0xff]  }
 0x218   :  { %2964 = vmatpush1.bf16.msra.mxu1 %v4576_v21  ;;  %v4626_v21 = vld [vmem:[#allocation10 + $0x224] ss:$8 sps:$4 sm:$0xff]  }
 0x219   :  { %2965 = vmatprep.subr.bf16.mxu1 %v4581_v22  ;;  %v4624_v22 = vld [vmem:[#allocation10 + $0x220] ss:$8 sps:$4 sm:$0xff]  }
 0x21a   :  { %2939 = vmatpush2.bf16.msra.mxu0 %v4552_v23  ;;  %v4629_v23 = vld [vmem:[#allocation10 + $0x214] ss:$8 sps:$4 sm:$0xff]  }
 0x21b   :  { %2940 = vmatprep.subr.bf16.mxu0 %v4557_v35  ;;  %v4632_v35 = vld [vmem:[#allocation10 + $0x204] ss:$8 sps:$4 sm:$0xff]  }
 0x21c   :  { %2966 = vmatpush1.bf16.msra.mxu1 %v4579_v24  ;;  %v4630_v24 = vld [vmem:[#allocation10 + $0x200] ss:$8 sps:$4 sm:$0xff]  }
 0x21d   :  { %2967 = vmatprep.subr.bf16.mxu1 %v4584_v25  ;;  %v782_v25 = vrot.slane %v5101_v48, %v189_v37 }
 0x21e   :  { %2941 = vmatpush2.bf16.msra.mxu0 %v4555_v15  ;;  %v786_v15 = vrot.slane %v5101_v48, %v193_v39 }
 0x21f   :  { %2942 = vmatprep.subr.bf16.mxu0 %v4560_v28 }
 0x220   :  { %2968 = vmatpush1.bf16.msra.mxu1 %v4582_v3 }
 0x221   :  { %2969 = vmatprep.subr.bf16.mxu1 %v4587_v60 }
 0x222   :  { %2943 = vmatpush2.bf16.msra.mxu0 %v4558_v29 }
 0x223   :  { %2994 = vmatprep.subr.bf16.mxu0 %v4611_v41 }
 0x224   :  { %2970 = vmatpush2.bf16.msra.mxu1 %v4585_v27 }
 0x225   :  { %2971 = vmatprep.subr.bf16.mxu1 %v4590_v30 }
 0x228   :  { %2972 = vmatpush2.bf16.msra.mxu1 %v4588_v31 }
 0x229   :  { %2973 = vmatprep.subr.bf16.mxu1 %v4593_v32 }
 0x22c   :  { %2974 = vmatpush2.bf16.msra.mxu1 %v4591_v33 }
 0x22d   :  { %2975 = vmatprep.subr.bf16.mxu1 %v4596_v40 }
 0x230   :  { %2976 = vmatpush2.bf16.msra.mxu1 %v4594_v42 }
 0x231   :  { %2977 = vmatprep.subr.bf16.mxu1 %v4599_v43 }
 0x234   :  { %2978 = vmatpush2.bf16.msra.mxu1 %v4597_v44 }
 0x235   :  { %2979 = vmatprep.subr.bf16.mxu1 %v4602_v45 }
 0x238   :  { %2980 = vmatpush2.bf16.msra.mxu1 %v4600_v46 }
 0x239   :  { %2981 = vmatprep.subr.bf16.mxu1 %v4605_v47 }
 0x23c   :  { %2982 = vmatpush2.bf16.msra.mxu1 %v4603_v49 }
 0x23d   :  { %2983 = vmatprep.subr.bf16.mxu1 %v4608_v50 }
 0x240   :  { %2984 = vmatpush2.bf16.msra.mxu1 %v4606_v53 }
 0x243   :  { %v2160_v58 = vpop.f32.mrf.mxu1  ;;  %v2201_v61 = vpop.f32.mrf.mxu0 }
 0x244   :  { %v2161_v63 = vadd.f32 %v2160_v58, %v2120_v1  ;;  %v2202_v28 = vadd.f32 %v2201_v61, %v782_v25  ;;  %v790_v1 = vrot.slane %v5101_v48, %v197_v7  ;;  %v4641_v7 = vld [vmem:[#allocation11 + $0x54] ss:$8 sps:$4 sm:$0xff]   ;;  %v4639_v48 = vld [vmem:[#allocation11 + $0x50] ss:$8 sps:$4 sm:$0xff]  }
 0x245   :  { %v2162_v4 = vpop.f32.mrf.mxu1  ;;  %v2203_v26 = vpop.f32.mrf.mxu0  ;;  %v4663_v25 = vld [vmem:[#allocation11 + $0xd0] ss:$8 sps:$4 sm:$0xff]  }
 0x246   :  { %v2163_v5 = vadd.f32 %v2162_v4, %v2122_v62  ;;  %v2410_v6 = vmax.f32 %v2161_v63, 0.0  ;;  %v2204_v60 = vadd.f32 %v2203_v26, %v786_v15  ;;  %v4668_v15 = vld [vmem:[#allocation11 + $0xc4] ss:$8 sps:$4 sm:$0xff]  }
 0x247   :  { %v2164_v8 = vpop.f32.mrf.mxu1  ;;  %v2205_v9 = vpop.f32.mrf.mxu0 }
 0x248   :  { %v2411_v10 = vmax.f32 %v2163_v5, 0.0  ;;  %v2415_v59 = vpack.c.bf16 %v2410_v6, %v2410_v6 }
 0x249   :  { %v2165_v11 = vpop.f32.mrf.mxu1  ;;  %v2206_v12 = vpop.f32.mrf.mxu0 }
 0x24a   :  { %v2416_v56 = vpack.c.bf16 %v2411_v10, %v2411_v10  ;;  %v4633_v12 = vld [vmem:[#allocation11 + $0x70] ss:$8 sps:$4 sm:$0xff]  }
 0x24c   :  { %2944 = vmatprep.mubr.bf16.mxu0 %v2416_v56  ;;  %v4635_v56 = vld [vmem:[#allocation11 + $0x74] ss:$8 sps:$4 sm:$0xff]  }
 0x24d   :  { %2945 = vmatmul.mubr.bf16.vlgmr.msra.gmra.mxu0 %v2415_v59  ;;  %3243 = vmatprep.subr.bf16.mxu1 %v4635_v56  ;;  %v4644_v59 = vld [vmem:[#allocation11 + $0x44] ss:$8 sps:$4 sm:$0xff]  }
 0x24e   :  { %2995 = vmatpush1.bf16.msra.mxu0 %v4609_v13  ;;  %3026 = vmatprep.mubr.bf16.mxu0 %v4913_v0  ;;  %v4627_v0 = vld [vmem:[#allocation10 + $0x210] ss:$8 sps:$4 sm:$0xff]   ;;  %v4638_v13 = vld [vmem:[#allocation11 + $0x64] ss:$8 sps:$4 sm:$0xff]  }
 0x24f   :  { %2996 = vmatprep.subr.bf16.mxu0 %v4614_v14  ;;  %v4642_v14 = vld [vmem:[#allocation11 + $0x40] ss:$8 sps:$4 sm:$0xff]  }
 0x252   :  { %2997 = vmatpush1.bf16.msra.mxu0 %v4612_v57  ;;  %v4647_v57 = vld [vmem:[#allocation11 + $0x34] ss:$8 sps:$4 sm:$0xff]  }
 0x253   :  { %2998 = vmatprep.subr.bf16.mxu0 %v4617_v2  ;;  %v4645_v2 = vld [vmem:[#allocation11 + $0x30] ss:$8 sps:$4 sm:$0xff]  }
 0x256   :  { %2999 = vmatpush1.bf16.msra.mxu0 %v4615_v16  ;;  %v4650_v16 = vld [vmem:[#allocation11 + $0x24] ss:$8 sps:$4 sm:$0xff]  }
 0x257   :  { %3000 = vmatprep.subr.bf16.mxu0 %v4620_v17  ;;  %v4648_v17 = vld [vmem:[#allocation11 + $0x20] ss:$8 sps:$4 sm:$0xff]  }
 0x25a   :  { %3001 = vmatpush1.bf16.msra.mxu0 %v4618_v18  ;;  %v4653_v18 = vld [vmem:[#allocation11 + $0x14] ss:$8 sps:$4 sm:$0xff]  }
 0x25b   :  { %3002 = vmatprep.subr.bf16.mxu0 %v4623_v19  ;;  %v4651_v19 = vld [vmem:[#allocation11 + $0x10] ss:$8 sps:$4 sm:$0xff]  }
 0x25e   :  { %3003 = vmatpush1.bf16.msra.mxu0 %v4621_v20  ;;  %v4656_v20 = vld [vmem:[#allocation11 + $0x4] ss:$8 sps:$4 sm:$0xff]  }
 0x25f   :  { %3004 = vmatprep.subr.bf16.mxu0 %v4626_v21  ;;  %v4654_v21 = vld [vmem:[#allocation11] ss:$8 sps:$4 sm:$0xff]  }
 0x262   :  { %3005 = vmatpush1.bf16.msra.mxu0 %v4624_v22  ;;  %v4659_v22 = vld [vmem:[#allocation11 + $0xf4] ss:$8 sps:$4 sm:$0xff]  }
 0x263   :  { %3006 = vmatprep.subr.bf16.mxu0 %v4629_v23  ;;  %v4657_v23 = vld [vmem:[#allocation11 + $0xf0] ss:$8 sps:$4 sm:$0xff]  }
 0x266   :  { %3007 = vmatpush1.bf16.msra.mxu0 %v4627_v0  ;;  %v4662_v0 = vld [vmem:[#allocation11 + $0xe4] ss:$8 sps:$4 sm:$0xff]  }
 0x267   :  { %3008 = vmatprep.subr.bf16.mxu0 %v4632_v35  ;;  %v4660_v35 = vld [vmem:[#allocation11 + $0xe0] ss:$8 sps:$4 sm:$0xff]  }
 0x26a   :  { %3009 = vmatpush1.bf16.msra.mxu0 %v4630_v24  ;;  %v4665_v24 = vld [vmem:[#allocation11 + $0xd4] ss:$8 sps:$4 sm:$0xff]  }
 0x283   :  { %v2242_v3 = vpop.f32.mrf.mxu1 }
 0x284   :  { %v2243_v29 = vadd.f32 %v2242_v3, %v2202_v28  ;;  %v2283_v27 = vpop.f32.mrf.mxu0  ;;  %v4666_v28 = vld [vmem:[#allocation11 + $0xc0] ss:$8 sps:$4 sm:$0xff]   ;;  %v4671_v3 = vld [vmem:[#allocation11 + $0xb4] ss:$8 sps:$4 sm:$0xff]  }
 0x285   :  { %v2244_v30 = vpop.f32.mrf.mxu1 }
 0x286   :  { %v2284_v31 = vadd.f32 %v2283_v27, %v2243_v29  ;;  %v2245_v32 = vadd.f32 %v2244_v30, %v2204_v60  ;;  %v2285_v33 = vpop.f32.mrf.mxu0  ;;  %v4669_v60 = vld [vmem:[#allocation11 + $0xb0] ss:$8 sps:$4 sm:$0xff]   ;;  %v4674_v29 = vld [vmem:[#allocation11 + $0xa4] ss:$8 sps:$4 sm:$0xff]   ;;  %v4672_v27 = vld [vmem:[#allocation11 + $0xa0] ss:$8 sps:$4 sm:$0xff]  }
 0x287   :  { %v2246_v40 = vpop.f32.mrf.mxu1 }
 0x288   :  { %v2286_v41 = vadd.f32 %v2285_v33, %v2245_v32  ;;  %v2287_v42 = vpop.f32.mrf.mxu0  ;;  %v2412_v43 = vmax.f32 %v2284_v31, 0.0  ;;  %v4677_v32 = vld [vmem:[#allocation11 + $0x94] ss:$8 sps:$4 sm:$0xff]   ;;  %v4675_v40 = vld [vmem:[#allocation11 + $0x90] ss:$8 sps:$4 sm:$0xff]  }
 0x289   :  { %v2247_v44 = vpop.f32.mrf.mxu1  ;;  %v4680_v42 = vld [vmem:[#allocation11 + $0x84] ss:$8 sps:$4 sm:$0xff]  }
 0x28a   :  { %v2413_v45 = vmax.f32 %v2286_v41, 0.0  ;;  %v2288_v37 = vpop.f32.mrf.mxu0  ;;  %v2417_v47 = vpack.c.bf16 %v2412_v43, %v2412_v43  ;;  %v4678_v43 = vld [vmem:[#allocation11 + $0x80] ss:$8 sps:$4 sm:$0xff]   ;;  %v4681_v44 = vld [vmem:[#allocation13 + $0x78] sm:$0xff]  }
 0x28b   :  { %v4683_v37 = vld [vmem:[#allocation13 + $0x70] sm:$0xff]   ;;  %4070 = vmatprep.subr.bf16.mxu0 %v4681_v44 }
 0x28c   :  { %v2418_v46 = vpack.c.bf16 %v2413_v45, %v2413_v45  ;;  %v4682_v45 = vld [vmem:[#allocation13 + $0x38] sm:$0xff]  }
 0x28e   :  { %2985 = vmatprep.mubr.bf16.mxu1 %v2418_v46  ;;  %v4684_v46 = vld [vmem:[#allocation13 + $0x30] sm:$0xff]  }
 0x28f   :  { %2986 = vmatmul.mubr.bf16.vlgmr.msra.gmra.mxu1 %v2417_v47  ;;  %v4685_v47 = vld [vmem:[#allocation13 + $0x68] sm:$0xff]  }
 0x290   :  { %3244 = vmatpush1.bf16.msra.mxu1 %v4633_v12 }
 0x291   :  { %3245 = vmatprep.subr.bf16.mxu1 %v4638_v13 }
 0x294   :  { %3246 = vmatpush1.bf16.msra.mxu1 %v4636_v34 }
 0x295   :  { %3247 = vmatprep.subr.bf16.mxu1 %v4641_v7 }
 0x298   :  { %3248 = vmatpush1.bf16.msra.mxu1 %v4639_v48 }
 0x299   :  { %3249 = vmatprep.subr.bf16.mxu1 %v4644_v59 }
 0x29c   :  { %3250 = vmatpush1.bf16.msra.mxu1 %v4642_v14  ;;  %v4693_v14 = vld [vmem:[#allocation13 + $0x48] sm:$0xff]  }
 0x29d   :  { %3251 = vmatprep.subr.bf16.mxu1 %v4647_v57  ;;  %v4694_v57 = vld [vmem:[#allocation13 + $0x8] sm:$0xff]  }
 0x2a0   :  { %3252 = vmatpush1.bf16.msra.mxu1 %v4645_v2  ;;  %v4695_v2 = vld [vmem:[#allocation13 + $0x40] sm:$0xff]  }
 0x2a1   :  { %3253 = vmatprep.subr.bf16.mxu1 %v4650_v16  ;;  %v4696_v16 = vld [vmem:[#allocation13] sm:$0xff]  }
 0x2a3   :  { %v4020_v39 = vpop.f32.mrf.mxu1 }
 0x2a4   :  { %v4042_v49 = vpop.f32.mrf.mxu0  ;;  %3254 = vmatpush1.bf16.msra.mxu1 %v4648_v17  ;;  %v4914_v17 = vmov 0.0  }
 0x2a5   :  { %v4021_v50 = vpop.f32.mrf.mxu1  ;;  %3255 = vmatprep.subr.bf16.mxu1 %v4653_v18  ;;  %v3071_v18 = vld [vmem:[%s5148_s8] sm:$0x3] }
 0x2a6   :  { %v4043_v51 = vpop.f32.mrf.mxu0  ;;  %v4022_v58 = vadd.f32 %v4021_v50, %v4020_v39  ;;  %v4686_v39 = vld [vmem:[#allocation13 + $0x28] sm:$0xff]   ;;  %v4688_v50 = vld [vmem:[#allocation13 + $0x20] sm:$0xff]  }
 0x2a7   :  { %v4023_v52 = vpop.f32.mrf.mxu1  ;;  %v4044_v63 = vadd.f32 %v4043_v51, %v4042_v49  ;;  %v4687_v49 = vld [vmem:[#allocation13 + $0x60] sm:$0xff]   ;;  %v4689_v51 = vld [vmem:[#allocation13 + $0x58] sm:$0xff]  }
 0x2a8   :  { %v4045_v53 = vpop.f32.mrf.mxu0  ;;  %v2325_v61 = vadd.f32 %v4022_v58, %v790_v1  ;;  %3256 = vmatpush1.bf16.msra.mxu1 %v4651_v19  ;;  %v4690_v52 = vld [vmem:[#allocation13 + $0x18] sm:$0xff]   ;;  %v3076_v19 = vrot.slane %v3071_v18, %v5034_v36 }
 0x2a9   :  { %v4024_v54 = vpop.f32.mrf.mxu1  ;;  %3257 = vmatprep.subr.bf16.mxu1 %v4656_v20  ;;  %v4691_v53 = vld [vmem:[#allocation13 + $0x50] sm:$0xff]   ;;  %v3080_v20 = vrot.slane %v3071_v18, %v5038_v38 }
 0x2aa   :  { %v4046_v55 = vpop.f32.mrf.mxu0  ;;  %v2365_v26 = vadd.f32 %v4044_v63, %v2325_v61  ;;  %v4692_v54 = vld [vmem:[#allocation13 + $0x10] sm:$0xff]  }
 0x2ab   :  { %v2500_v55 = vld [vmem:[%s5146_s6] sm:$0x3] }
 0x2ac   :  { %3258 = vmatpush1.bf16.msra.mxu1 %v4654_v21  ;;  %v2505_v1 = vrot.slane %v2500_v55, %v5034_v36  ;;  %v4699_v36 = vld [vmem:[#allocation14 + $0x28] sm:$0xff]  }
 0x2ad   :  { %3259 = vmatprep.subr.bf16.mxu1 %v4659_v22 }
 0x2b0   :  { %3260 = vmatpush2.bf16.msra.mxu1 %v4657_v23 }
 0x2b1   :  { %3261 = vmatprep.subr.bf16.mxu1 %v4662_v0 }
 0x2b4   :  { %3262 = vmatpush2.bf16.msra.mxu1 %v4660_v35 }
 0x2b5   :  { %3263 = vmatprep.subr.bf16.mxu1 %v4665_v24 }
 0x2b8   :  { %3264 = vmatpush2.bf16.msra.mxu1 %v4663_v25 }
 0x2b9   :  { %3265 = vmatprep.subr.bf16.mxu1 %v4668_v15 }
 0x2bc   :  { %3266 = vmatpush2.bf16.msra.mxu1 %v4666_v28 }
 0x2bd   :  { %3267 = vmatprep.subr.bf16.mxu1 %v4671_v3  ;;  %v4697_v3 = vld [vmem:[#allocation14 + $0x38] sm:$0xff]  }
 0x2c0   :  { %3268 = vmatpush2.bf16.msra.mxu1 %v4669_v60 }
 0x2c1   :  { %3269 = vmatprep.subr.bf16.mxu1 %v4674_v29  ;;  %v4698_v29 = vld [vmem:[#allocation14 + $0x30] sm:$0xff]  }
 0x2c3   :  { %v4064_v62 = vpop.f32.mrf.mxu1 }
 0x2c4   :  { %3270 = vmatpush2.bf16.msra.mxu1 %v4672_v27  ;;  %v4701_v27 = vld [vmem:[#allocation14 + $0x18] sm:$0xff]  }
 0x2c5   :  { %v4065_v4 = vpop.f32.mrf.mxu1  ;;  %3271 = vmatprep.subr.bf16.mxu1 %v4677_v32  ;;  %v4704_v32 = vld [vmem:[#allocation14] sm:$0xff]  }
 0x2c6   :  { %v4066_v5 = vadd.f32 %v4065_v4, %v4064_v62 }
 0x2c7   :  { %v4067_v6 = vpop.f32.mrf.mxu1 }
 0x2c8   :  { %v2405_v8 = vadd.f32 %v4066_v5, %v2365_v26  ;;  %3272 = vmatpush2.bf16.msra.mxu1 %v4675_v40  ;;  %v2509_v5 = vrot.slane %v2500_v55, %v5038_v38  ;;  %v4700_v38 = vld [vmem:[#allocation14 + $0x20] sm:$0xff]   ;;  %v3978_v40 = vld [vmem:[%s5150_s10] ss:$0 sm:$0xff]  ;;  %s4865_s10 = scalar_lea.vmem %s3584_s7, 128 }
 0x2c9   :  { %v4068_v9 = vpop.f32.mrf.mxu1  ;;  %3273 = vmatprep.subr.bf16.mxu1 %v4680_v42  ;;  %p4866_p12 = scmp.ne.s32.totalorder %s3584_s7, %s4865_s10  ;;  %p4871_p0 = scmp.lt.s32.totalorder %s4865_s10, %s4865_s10 }
 0x2ca   :  { %v2414_v10 = vmax.f32 %v2405_v8, 0.0 }
 0x2cb   :  { %p4872_p1 = por %p4871_p0, %p4870_p13 }
 0x2cc   :  { %v2419_v11 = vpack.c.bf16 %v2414_v10, %v2414_v10  ;;  %3274 = vmatpush2.bf16.msra.mxu1 %v4678_v43 }
 0x2cd   :  { %p4873_p2 = pnand %p4872_p1, %p4866_p12 }
 0x2ce   :  { %3027 = vmatmul.mubr.bf16.vlgmr.msra.gmra.mxu0 %v2419_v11 }
 0x2cf   :  { %4071 = vmatpush3.bf16.msra.mxu0 %v4682_v45 }
 0x2d0   :  { %4072 = vmatprep.subr.bf16.mxu0 %v4683_v37 }
 0x2d3   :  { %4073 = vmatpush3.bf16.msra.mxu0 %v4684_v46 }
 0x2d4   :  { %4074 = vmatprep.subr.bf16.mxu0 %v4685_v47  ;;  %v3995_v47 = vld [vmem:[%s5152_s12] ss:$0 sm:$0xff] }
 0x2d7   :  { %4075 = vmatpush3.bf16.msra.mxu0 %v4686_v39 }
 0x2d8   :  { %4076 = vmatprep.subr.bf16.mxu0 %v4687_v49 }
 0x2db   :  { %4077 = vmatpush3.bf16.msra.mxu0 %v4688_v50 }
 0x2dc   :  { %4078 = vmatprep.subr.bf16.mxu0 %v4689_v51 }
 0x2df   :  { %4079 = vmatpush3.bf16.msra.mxu0 %v4690_v52 }
 0x2e0   :  { %4080 = vmatprep.subr.bf16.mxu0 %v4691_v53 }
 0x2e3   :  { %4081 = vmatpush3.bf16.msra.mxu0 %v4692_v54 }
 0x2e4   :  { %4082 = vmatprep.subr.bf16.mxu0 %v4693_v14 }
 0x2e7   :  { %4083 = vmatpush3.bf16.msra.mxu0 %v4694_v57 }
 0x2e8   :  { %4084 = vmatprep.subr.bf16.mxu0 %v4695_v2 }
 0x2eb   :  { %4085 = vmatpush3.bf16.msra.mxu0 %v4696_v16 }
 0x2ec   :  { %4101 = vmatprep.subr.bf16.mxu0 %v4914_v17 }
 0x30d   :  { %v2946_v30 = vpop.f32.mrf.mxu0 }
 0x30e   :  { %v2947_v58 = vadd.f32 %v2946_v30, %v2505_v1  ;;  %v4702_v30 = vld [vmem:[#allocation14 + $0x10] sm:$0xff]  }
 0x30f   :  { %v2948_v31 = vpop.f32.mrf.mxu0 }
 0x310   :  { %v2949_v6 = vadd.f32 %v2948_v31, %v2509_v5  ;;  %v4703_v31 = vld [vmem:[#allocation14 + $0x8] sm:$0xff]  }
 0x311   :  { %v2950_v33 = vpop.f32.mrf.mxu0 }
 0x313   :  { %v2951_v41 = vpop.f32.mrf.mxu0 }
 0x34f   :  { %v2987_v61 = vpop.f32.mrf.mxu1 }
 0x350   :  { %v2988_v62 = vadd.f32 %v2987_v61, %v2947_v58 }
 0x351   :  { %v2989_v63 = vpop.f32.mrf.mxu1 }
 0x352   :  { %v2990_v9 = vadd.f32 %v2989_v63, %v2949_v6 }
 0x353   :  { %v2991_v4 = vpop.f32.mrf.mxu1 }
 0x355   :  { %v2992_v26 = vpop.f32.mrf.mxu1 }
 0x38e   :  { %v3028_v8 = vpop.f32.mrf.mxu0 }
 0x38f   :  { %v3029_v10 = vadd.f32 %v3028_v8, %v2988_v62 }
 0x390   :  { %v3030_v11 = vpop.f32.mrf.mxu0 }
 0x391   :  { %v3031_v12 = vadd.f32 %v3030_v11, %v2990_v9  ;;  %v3035_v56 = vmax.f32 %v3029_v10, 0.0 }
 0x392   :  { %v3032_v13 = vpop.f32.mrf.mxu0 }
 0x393   :  { %v3036_v34 = vmax.f32 %v3031_v12, 0.0  ;;  %v3037_v59 = vpack.c.bf16 %v3035_v56, %v3035_v56 }
 0x394   :  { %v3033_v7 = vpop.f32.mrf.mxu0 }
 0x395   :  { %v3038_v48 = vpack.c.bf16 %v3036_v34, %v3036_v34 }
 0x397   :  { %3275 = vmatprep.mubr.bf16.mxu1 %v3038_v48 }
 0x398   :  { %3276 = vmatmul.mubr.bf16.vlgmr.msra.gmra.mxu1 %v3037_v59 }
 0x458   :  { %v3277_v21 = vpop.f32.mrf.mxu1 }
 0x459   :  { %v3278_v22 = vadd.f32 %v3277_v21, %v3076_v19 }
 0x45a   :  { %v3279_v23 = vpop.f32.mrf.mxu1 }
 0x45b   :  { %v3280_v0 = vadd.f32 %v3279_v23, %v3080_v20  ;;  %v3284_v35 = vmax.f32 %v3278_v22, 0.0 }
 0x45c   :  { %v3281_v24 = vpop.f32.mrf.mxu1 }
 0x45d   :  { %v3285_v25 = vmax.f32 %v3280_v0, 0.0  ;;  %v3286_v60 = vpack.c.bf16 %v3284_v35, %v3284_v35 }
 0x45e   :  { %v3282_v15 = vpop.f32.mrf.mxu1 }
 0x45f   :  { %v3287_v28 = vpack.c.bf16 %v3285_v25, %v3285_v25 }
 0x461   :  { %3455 = vmatprep.mubr.bf16.mxu0 %v3287_v28 }
 0x462   :  { %3456 = vmatmul.mubr.bf16.vlgmr.msra.gmra.mxu0 %v3286_v60 }
 0x463   :  { %4102 = vmatpush3.bf16.msra.mxu0 %v4697_v3  ;;  %4117 = vmatprep.mubr.msk.bf16.mxu0 %vm4915_vm2, %v4914_v17 }
 0x464   :  { %4103 = vmatprep.subr.bf16.mxu0 %v4914_v17 }
 0x467   :  { %4104 = vmatpush3.bf16.msra.mxu0 %v4698_v29 }
 0x468   :  { %4105 = vmatprep.subr.bf16.mxu0 %v4914_v17 }
 0x46b   :  { %4106 = vmatpush3.bf16.msra.mxu0 %v4699_v36 }
 0x46c   :  { %4107 = vmatprep.subr.bf16.mxu0 %v4914_v17 }
 0x46f   :  { %4108 = vmatpush3.bf16.msra.mxu0 %v4700_v38 }
 0x470   :  { %4109 = vmatprep.subr.bf16.mxu0 %v4914_v17 }
 0x473   :  { %4110 = vmatpush3.bf16.msra.mxu0 %v4701_v27 }
 0x474   :  { %4111 = vmatprep.subr.bf16.mxu0 %v4914_v17 }
 0x477   :  { %4112 = vmatpush3.bf16.msra.mxu0 %v4702_v30 }
 0x478   :  { %4113 = vmatprep.subr.bf16.mxu0 %v4914_v17 }
 0x47b   :  { %4114 = vmatpush3.bf16.msra.mxu0 %v4703_v31 }
 0x47c   :  { %4115 = vmatprep.subr.bf16.mxu0 %v4914_v17 }
 0x47f   :  { %4116 = vmatpush3.bf16.msra.mxu0 %v4704_v32 }
 0x522   :  { %v4086_v33 = vpop.f32.mrf.mxu0 }
 0x524   :  { %v4087_v41 = vpop.f32.mrf.mxu0 }
 0x525   :  { %v4088_v42 = vadd.f32 %v4087_v41, %v4086_v33 }
 0x526   :  { %v4089_v43 = vpop.f32.mrf.mxu0 }
 0x527   :  { %v3458_v44 = vadd.f32 %v4088_v42, %v3978_v40 }
 0x528   :  { %v4090_v45 = vpop.f32.mrf.mxu0 }
 0x529   :  { %v3463_v37 = vmax.f32 %v3458_v44, 0.0 }
 0x52b   :  { %v3464_v46 = vpack.c.bf16 %v3463_v37, %v3463_v37 }
 0x52d   :  { %4118 = vmatmul.mubr.bf16.vlgmr.msra.gmra.mxu0 %v3464_v46 }
 0x5ed   :  { %v3570_v39 = vpop.f32.mrf.mxu0 }
 0x5ee   :  { %v3571_v49 = vadd.f32 %v3995_v47, %v3570_v39 }
 0x5ef   :  { %v4119_v50 = vpop.f32.mrf.mxu0 }
 0x5f0   :  { %3576 = vst [vmem:[#allocation16] sm:$0xff] %v3571_v49 }
 0x5f1   :  { %v3573_v51 = vpop.f32.mrf.mxu0 }
 0x5f2   :  { %4876 = shalt.err (!%p4873_p2)
}
 0x5f3   :  { %3586 = dma.vmem_to_hbm [thread:$0]  %s3584_s7, 128, %s5153_s13, [#allocation4]   ;;  %v4120_v52 = vpop.f32.mrf.mxu0 }
 0x5f4   :  { %4895 = dma.done.wait [#allocation4], 128  }
 0x5f5   :  { %4896 = vsyncadd [#allocation4], 4294967168 }
 0x5f6   :  { %3590 = vsyncpa [#allocation3], 1 }
 0x5f7   :  { %3591 = vsyncpa [#allocation6], 1 }
 0x5f8   :  { %3592 = vsyncpa [#allocation9], 1 }
 0x5f9   :  { %3593 = vsyncpa [#allocation12], 1 }
 0x5fa   :  { %3594 = vsyncpa [#allocation15], 1 }
 0x5fb   :  { %3595 = vsyncpa [#allocation4], 1 }

</bundles_post_ra>
